<compile_context>
chip_gen: v6e
topology: v6e:2x2x1
jax: 0.10.0
libtpu: 0.0.40
codegen_flags: <defaults>
</compile_context>

<pallas_src>
import functools

import jax
import jax.numpy as jnp
from jax import lax
from jax.experimental import pallas as pl
from jax.experimental.pallas import tpu as pltpu

# ---------------------------------------------------------------------------
# Model hyper-parameters (small, consistent with the module's __init__)
# ---------------------------------------------------------------------------
DIM = 32                      # `dim`
HEADS = 4                     # `heads`
DIM_HEAD = 16                 # `dim_head`
INNER = HEADS * DIM_HEAD      # 64
SCALE = DIM_HEAD ** (-0.5)    # 0.25 (exact power of two -> folding is bit-exact)
LN_EPS = 1e-5

BATCH = 2
SEQ = 8


# ---------------------------------------------------------------------------
# Pallas kernel: full attention forward, all batch elements in one shot
# ---------------------------------------------------------------------------
def attention_kernel(x_ref, w_qkv_ref, w_out_ref, params_ref, o_ref):
    # x_ref:      (B*N, D)        batch folded into the sublane/row axis
    # w_qkv_ref:  (3, H, D, dh)   head-major q/k/v weights (SCALE folded into q)
    # w_out_ref:  (H, dh, D)      head-major output projection
    # params_ref: (3, D)          rows = gamma, beta, b_out
    x = x_ref[...].astype(jnp.float32)                          # (B*N, D)

    gamma = params_ref[0:1, :]                                  # (1, D)
    beta = params_ref[1:2, :]                                   # (1, D)
    b_out = params_ref[2:3, :]                                  # (1, D)

    # ---- LayerNorm(dim) ----------------------------------------------------
    mean = jnp.mean(x, axis=-1, keepdims=True)
    var = jnp.mean((x - mean) ** 2, axis=-1, keepdims=True)
    xn = (x - mean) * lax.rsqrt(var + LN_EPS)
    xn = xn * gamma + beta                                      # (B*N, D)

    # ---- per-batch, per-head attention with fused output projection ---------
    # All indices/slices below are static (unrolled at trace time):
    #   * row slices are 8-sublane aligned,
    #   * weight indexing is leading-axis only (no lane relayout),
    #   * q @ k^T is expressed via dot_general so the MXU takes K untransposed.
    for b in range(BATCH):                                      # static unrolled
        rsl = slice(b * SEQ, (b + 1) * SEQ)
        xb = xn[rsl]                                            # (N, D)
        y_b = jnp.zeros((SEQ, DIM), jnp.float32)                # fused out-proj acc
        for h in range(HEADS):                                  # static unrolled
            wq = w_qkv_ref[0, h]                                # (D, dh), pre-scaled
            wk = w_qkv_ref[1, h]
            wv = w_qkv_ref[2, h]
            qh = jnp.dot(xb, wq, preferred_element_type=jnp.float32)   # (N, dh)
            kh = jnp.dot(xb, wk, preferred_element_type=jnp.float32)
            vh = jnp.dot(xb, wv, preferred_element_type=jnp.float32)

            # q @ k^T without an explicit transpose (contract both last dims)
            dots = lax.dot_general(qh, kh, (((1,), (1,)), ((), ())),
                                   preferred_element_type=jnp.float32)  # (N, N)
            dots = dots - jnp.max(dots, axis=-1, keepdims=True)
            e = jnp.exp(dots)
            attn = e / jnp.sum(e, axis=-1, keepdims=True)       # exact division
            # dropout(p=0.0) is identity

            oh = jnp.dot(attn, vh, preferred_element_type=jnp.float32)  # (N, dh)
            # fused output projection: accumulate oh @ W_out[h] into y_b
            y_b = y_b + jnp.dot(oh, w_out_ref[h],
                                preferred_element_type=jnp.float32)     # (N, D)

        # direct, 8-sublane-aligned per-batch store (no concat / extra copy)
        o_ref[rsl, :] = (y_b + b_out).astype(o_ref.dtype)


# ---------------------------------------------------------------------------
# Wrapper
# ---------------------------------------------------------------------------
@functools.partial(jax.jit, static_argnames=())
def attention_forward(x, gamma, beta, w_qkv, w_out, b_out):
    B, N, D = x.shape
    x2d = x.reshape(B * N, D)                 # fold batch into rows (free at XLA)

    # Head-major weight repacking + SCALE fold, done once at trace time on tiny
    # arrays (free). NOTE: folding SCALE into W_q is bit-exact only because
    # SCALE = 0.25 is a power of two; guard if dim_head changes.
    def head_major(w):                        # (D, INNER) -> (H, D, dh)
        return w.reshape(D, HEADS, DIM_HEAD).transpose(1, 0, 2)

    w_q = head_major(w_qkv[:, 0 * INNER:1 * INNER] * jnp.float32(SCALE))
    w_k = head_major(w_qkv[:, 1 * INNER:2 * INNER])
    w_v = head_major(w_qkv[:, 2 * INNER:3 * INNER])
    w_qkv_packed = jnp.stack([w_q, w_k, w_v], axis=0)           # (3, H, D, dh)
    w_out_hm = w_out.reshape(HEADS, DIM_HEAD, D)                # (H, dh, D)
    params = jnp.concatenate([gamma.reshape(1, D),
                              beta.reshape(1, D),
                              b_out.reshape(1, D)], axis=0)     # (3, D)

    vmem = pl.BlockSpec(memory_space=pltpu.MemorySpace.VMEM)
    y2d = pl.pallas_call(
        attention_kernel,
        out_shape=jax.ShapeDtypeStruct((B * N, D), x.dtype),
        in_specs=[vmem] * 4,
        out_specs=vmem,
    )(x2d, w_qkv_packed, w_out_hm, params)
    return y2d.reshape(B, N, D)


# ---------------------------------------------------------------------------
# Pure-JAX reference (mirrors the PyTorch forward exactly)
# ---------------------------------------------------------------------------
def attention_reference(x, gamma, beta, w_qkv, w_out, b_out):
    mean = jnp.mean(x, axis=-1, keepdims=True)
    var = jnp.mean((x - mean) ** 2, axis=-1, keepdims=True)
    xn = (x - mean) / jnp.sqrt(var + LN_EPS) * gamma[0] + beta[0]
    qkv = xn @ w_qkv                                       # (B, N, 3*INNER)
    q, k, v = jnp.split(qkv, 3, axis=-1)

    def to_heads(t):                                       # 'b n (h d) -> b h n d'
        B, N, _ = t.shape
        return t.reshape(B, N, HEADS, DIM_HEAD).transpose(0, 2, 1, 3)

    q, k, v = map(to_heads, (q, k, v))
    dots = jnp.einsum("bhnd,bhmd->bhnm", q, k) * SCALE
    attn = jax.nn.softmax(dots, axis=-1)
    out = jnp.einsum("bhnm,bhmd->bhnd", attn, v)
    B, H, N, Dh = out.shape
    out = out.transpose(0, 2, 1, 3).reshape(B, N, H * Dh)  # 'b h n d -> b n (h d)'
    return out @ w_out + b_out[0]


# ---------------------------------------------------------------------------
if __name__ == "__main__":
    key = jax.random.PRNGKey(0)
    kx, kqkv, kout, kbout, kg = jax.random.split(key, 5)

    x = jax.random.normal(kx, (BATCH, SEQ, DIM), dtype=jnp.float32)

    # Deterministic parameter init (shapes from the module's __init__):
    #   LayerNorm(dim): gamma=ones, beta=zeros
    #   to_qkv: Linear(dim, inner_dim*3, bias=False)   -> W_qkv: (D, 3*INNER)
    #   to_out: Linear(inner_dim, dim) + Dropout(0.0)  -> W_out: (INNER, D), b_out: (D,)
    gamma = jnp.ones((1, DIM), dtype=jnp.float32)
    beta = jnp.zeros((1, DIM), dtype=jnp.float32)
    w_qkv = 0.05 * jax.random.normal(kqkv, (DIM, 3 * INNER), dtype=jnp.float32)
    w_out = 0.05 * jax.random.normal(kout, (INNER, DIM), dtype=jnp.float32)
    b_out = 0.01 * jax.random.normal(kbout, (1, DIM), dtype=jnp.float32)

    y = attention_forward(x, gamma, beta, w_qkv, w_out, b_out)
    y = jax.block_until_ready(y)

    y_ref = attention_reference(x, gamma, beta, w_qkv, w_out, b_out)
    assert y.shape == (BATCH, SEQ, DIM)
    # Exact softmax division -> tight tolerance again.
    assert jnp.allclose(y, y_ref, atol=1e-4, rtol=1e-4), "mismatch vs reference"

    print("KERNEL_OK")
</pallas_src>

<mosaic_0001>
module attributes {stable_mosaic.version = 11 : i64} {
  func.func @attention_kernel(%arg0: memref<16x32xf32, #tpu.memory_space<vmem>>, %arg1: memref<3x4x32x16xf32, #tpu.memory_space<vmem>>, %arg2: memref<4x16x32xf32, #tpu.memory_space<vmem>>, %arg3: memref<3x32xf32, #tpu.memory_space<vmem>>, %arg4: memref<16x32xf32, #tpu.memory_space<vmem>>) attributes {dimension_semantics = [], scalar_prefetch = 0 : i64, scratch_operands = 0 : i64, tpu.core_type = #tpu.core_type<tc>} {
    %c0 = arith.constant 0 : index
    %c0_0 = arith.constant 0 : index
    %0 = vector.load %arg0[%c0, %c0_0] : memref<16x32xf32, #tpu.memory_space<vmem>>, vector<16x32xf32>
    %c0_1 = arith.constant 0 : index
    %c0_2 = arith.constant 0 : index
    %1 = vector.load %arg3[%c0_1, %c0_2] : memref<3x32xf32, #tpu.memory_space<vmem>>, vector<1x32xf32>
    %c1 = arith.constant 1 : index
    %c0_3 = arith.constant 0 : index
    %2 = vector.load %arg3[%c1, %c0_3] : memref<3x32xf32, #tpu.memory_space<vmem>>, vector<1x32xf32>
    %c2 = arith.constant 2 : index
    %c0_4 = arith.constant 0 : index
    %3 = vector.load %arg3[%c2, %c0_4] : memref<3x32xf32, #tpu.memory_space<vmem>>, vector<1x32xf32>
    %cst = arith.constant dense<0.000000e+00> : vector<16xf32>
    %4 = vector.multi_reduction <add>, %0, %cst [1] : vector<16x32xf32> to vector<16xf32>
    %5 = vector.shape_cast %4 : vector<16xf32> to vector<16x1xf32>
    %cst_5 = arith.constant 3.200000e+01 : f32
    %6 = vector.broadcast %cst_5 : f32 to vector<16x1xf32>
    %7 = arith.divf %5, %6 : vector<16x1xf32>
    %8 = vector.broadcast %7 : vector<16x1xf32> to vector<16x32xf32>
    %9 = arith.subf %0, %8 : vector<16x32xf32>
    %10 = arith.mulf %9, %9 : vector<16x32xf32>
    %cst_6 = arith.constant dense<0.000000e+00> : vector<16xf32>
    %11 = vector.multi_reduction <add>, %10, %cst_6 [1] : vector<16x32xf32> to vector<16xf32>
    %12 = vector.shape_cast %11 : vector<16xf32> to vector<16x1xf32>
    %cst_7 = arith.constant 3.200000e+01 : f32
    %13 = vector.broadcast %cst_7 : f32 to vector<16x1xf32>
    %14 = arith.divf %12, %13 : vector<16x1xf32>
    %15 = vector.broadcast %7 : vector<16x1xf32> to vector<16x32xf32>
    %16 = arith.subf %0, %15 : vector<16x32xf32>
    %cst_8 = arith.constant 9.99999974E-6 : f32
    %17 = vector.broadcast %cst_8 : f32 to vector<16x1xf32>
    %18 = arith.addf %14, %17 : vector<16x1xf32>
    %19 = math.rsqrt %18 : vector<16x1xf32>
    %20 = vector.broadcast %19 : vector<16x1xf32> to vector<16x32xf32>
    %21 = arith.mulf %16, %20 : vector<16x32xf32>
    %22 = vector.broadcast %1 : vector<1x32xf32> to vector<16x32xf32>
    %23 = arith.mulf %21, %22 : vector<16x32xf32>
    %24 = vector.broadcast %2 : vector<1x32xf32> to vector<16x32xf32>
    %25 = arith.addf %23, %24 : vector<16x32xf32>
    %26 = vector.extract_strided_slice %25 {offsets = [0, 0], sizes = [8, 32], strides = [1, 1]} : vector<16x32xf32> to vector<8x32xf32>
    %cst_9 = arith.constant 0.000000e+00 : f32
    %27 = vector.broadcast %cst_9 : f32 to vector<8x32xf32>
    %c0_10 = arith.constant 0 : index
    %c0_11 = arith.constant 0 : index
    %c0_12 = arith.constant 0 : index
    %c0_13 = arith.constant 0 : index
    %28 = vector.load %arg1[%c0_10, %c0_11, %c0_12, %c0_13] : memref<3x4x32x16xf32, #tpu.memory_space<vmem>>, vector<1x1x32x16xf32>
    %29 = vector.shape_cast %28 : vector<1x1x32x16xf32> to vector<32x16xf32>
    %c1_14 = arith.constant 1 : index
    %c0_15 = arith.constant 0 : index
    %c0_16 = arith.constant 0 : index
    %c0_17 = arith.constant 0 : index
    %30 = vector.load %arg1[%c1_14, %c0_15, %c0_16, %c0_17] : memref<3x4x32x16xf32, #tpu.memory_space<vmem>>, vector<1x1x32x16xf32>
    %31 = vector.shape_cast %30 : vector<1x1x32x16xf32> to vector<32x16xf32>
    %c2_18 = arith.constant 2 : index
    %c0_19 = arith.constant 0 : index
    %c0_20 = arith.constant 0 : index
    %c0_21 = arith.constant 0 : index
    %32 = vector.load %arg1[%c2_18, %c0_19, %c0_20, %c0_21] : memref<3x4x32x16xf32, #tpu.memory_space<vmem>>, vector<1x1x32x16xf32>
    %33 = vector.shape_cast %32 : vector<1x1x32x16xf32> to vector<32x16xf32>
    %cst_22 = arith.constant dense<0.000000e+00> : vector<8x16xf32>
    %34 = tpu.matmul %26, %29, %cst_22 {dimension_numbers = #tpu.dot_dimension_numbers<[1], [0], [0], [1], [0, 0, 1, 1], [], []>} : vector<8x32xf32>, vector<32x16xf32>, vector<8x16xf32> -> vector<8x16xf32>
    %cst_23 = arith.constant dense<0.000000e+00> : vector<8x16xf32>
    %35 = tpu.matmul %26, %31, %cst_23 {dimension_numbers = #tpu.dot_dimension_numbers<[1], [0], [0], [1], [0, 0, 1, 1], [], []>} : vector<8x32xf32>, vector<32x16xf32>, vector<8x16xf32> -> vector<8x16xf32>
    %cst_24 = arith.constant dense<0.000000e+00> : vector<8x16xf32>
    %36 = tpu.matmul %26, %33, %cst_24 {dimension_numbers = #tpu.dot_dimension_numbers<[1], [0], [0], [1], [0, 0, 1, 1], [], []>} : vector<8x32xf32>, vector<32x16xf32>, vector<8x16xf32> -> vector<8x16xf32>
    %cst_25 = arith.constant dense<0.000000e+00> : vector<8x8xf32>
    %37 = tpu.matmul %34, %35, %cst_25 {dimension_numbers = #tpu.dot_dimension_numbers<[1], [1], [0], [0], [0, 0, 1, 0], [], []>} : vector<8x16xf32>, vector<8x16xf32>, vector<8x8xf32> -> vector<8x8xf32>
    %cst_26 = arith.constant dense<0xFF800000> : vector<8xf32>
    %38 = vector.multi_reduction <maximumf>, %37, %cst_26 [1] : vector<8x8xf32> to vector<8xf32>
    %39 = vector.shape_cast %38 : vector<8xf32> to vector<8x1xf32>
    %40 = vector.broadcast %39 : vector<8x1xf32> to vector<8x8xf32>
    %41 = arith.subf %37, %40 : vector<8x8xf32>
    %42 = math.exp %41 : vector<8x8xf32>
    %cst_27 = arith.constant dense<0.000000e+00> : vector<8xf32>
    %43 = vector.multi_reduction <add>, %42, %cst_27 [1] : vector<8x8xf32> to vector<8xf32>
    %44 = vector.shape_cast %43 : vector<8xf32> to vector<8x1xf32>
    %45 = vector.broadcast %44 : vector<8x1xf32> to vector<8x8xf32>
    %46 = arith.divf %42, %45 : vector<8x8xf32>
    %cst_28 = arith.constant dense<0.000000e+00> : vector<8x16xf32>
    %47 = tpu.matmul %46, %36, %cst_28 {dimension_numbers = #tpu.dot_dimension_numbers<[1], [0], [0], [1], [0, 0, 1, 1], [], []>} : vector<8x8xf32>, vector<8x16xf32>, vector<8x16xf32> -> vector<8x16xf32>
    %c0_29 = arith.constant 0 : index
    %c0_30 = arith.constant 0 : index
    %c0_31 = arith.constant 0 : index
    %48 = vector.load %arg2[%c0_29, %c0_30, %c0_31] : memref<4x16x32xf32, #tpu.memory_space<vmem>>, vector<1x16x32xf32>
    %49 = vector.shape_cast %48 : vector<1x16x32xf32> to vector<16x32xf32>
    %cst_32 = arith.constant dense<0.000000e+00> : vector<8x32xf32>
    %50 = tpu.matmul %47, %49, %cst_32 {dimension_numbers = #tpu.dot_dimension_numbers<[1], [0], [0], [1], [0, 0, 1, 1], [], []>} : vector<8x16xf32>, vector<16x32xf32>, vector<8x32xf32> -> vector<8x32xf32>
    %51 = arith.addf %27, %50 : vector<8x32xf32>
    %c0_33 = arith.constant 0 : index
    %c1_34 = arith.constant 1 : index
    %c0_35 = arith.constant 0 : index
    %c0_36 = arith.constant 0 : index
    %52 = vector.load %arg1[%c0_33, %c1_34, %c0_35, %c0_36] : memref<3x4x32x16xf32, #tpu.memory_space<vmem>>, vector<1x1x32x16xf32>
    %53 = vector.shape_cast %52 : vector<1x1x32x16xf32> to vector<32x16xf32>
    %c1_37 = arith.constant 1 : index
    %c1_38 = arith.constant 1 : index
    %c0_39 = arith.constant 0 : index
    %c0_40 = arith.constant 0 : index
    %54 = vector.load %arg1[%c1_37, %c1_38, %c0_39, %c0_40] : memref<3x4x32x16xf32, #tpu.memory_space<vmem>>, vector<1x1x32x16xf32>
    %55 = vector.shape_cast %54 : vector<1x1x32x16xf32> to vector<32x16xf32>
    %c2_41 = arith.constant 2 : index
    %c1_42 = arith.constant 1 : index
    %c0_43 = arith.constant 0 : index
    %c0_44 = arith.constant 0 : index
    %56 = vector.load %arg1[%c2_41, %c1_42, %c0_43, %c0_44] : memref<3x4x32x16xf32, #tpu.memory_space<vmem>>, vector<1x1x32x16xf32>
    %57 = vector.shape_cast %56 : vector<1x1x32x16xf32> to vector<32x16xf32>
    %cst_45 = arith.constant dense<0.000000e+00> : vector<8x16xf32>
    %58 = tpu.matmul %26, %53, %cst_45 {dimension_numbers = #tpu.dot_dimension_numbers<[1], [0], [0], [1], [0, 0, 1, 1], [], []>} : vector<8x32xf32>, vector<32x16xf32>, vector<8x16xf32> -> vector<8x16xf32>
    %cst_46 = arith.constant dense<0.000000e+00> : vector<8x16xf32>
    %59 = tpu.matmul %26, %55, %cst_46 {dimension_numbers = #tpu.dot_dimension_numbers<[1], [0], [0], [1], [0, 0, 1, 1], [], []>} : vector<8x32xf32>, vector<32x16xf32>, vector<8x16xf32> -> vector<8x16xf32>
    %cst_47 = arith.constant dense<0.000000e+00> : vector<8x16xf32>
    %60 = tpu.matmul %26, %57, %cst_47 {dimension_numbers = #tpu.dot_dimension_numbers<[1], [0], [0], [1], [0, 0, 1, 1], [], []>} : vector<8x32xf32>, vector<32x16xf32>, vector<8x16xf32> -> vector<8x16xf32>
    %cst_48 = arith.constant dense<0.000000e+00> : vector<8x8xf32>
    %61 = tpu.matmul %58, %59, %cst_48 {dimension_numbers = #tpu.dot_dimension_numbers<[1], [1], [0], [0], [0, 0, 1, 0], [], []>} : vector<8x16xf32>, vector<8x16xf32>, vector<8x8xf32> -> vector<8x8xf32>
    %cst_49 = arith.constant dense<0xFF800000> : vector<8xf32>
    %62 = vector.multi_reduction <maximumf>, %61, %cst_49 [1] : vector<8x8xf32> to vector<8xf32>
    %63 = vector.shape_cast %62 : vector<8xf32> to vector<8x1xf32>
    %64 = vector.broadcast %63 : vector<8x1xf32> to vector<8x8xf32>
    %65 = arith.subf %61, %64 : vector<8x8xf32>
    %66 = math.exp %65 : vector<8x8xf32>
    %cst_50 = arith.constant dense<0.000000e+00> : vector<8xf32>
    %67 = vector.multi_reduction <add>, %66, %cst_50 [1] : vector<8x8xf32> to vector<8xf32>
    %68 = vector.shape_cast %67 : vector<8xf32> to vector<8x1xf32>
    %69 = vector.broadcast %68 : vector<8x1xf32> to vector<8x8xf32>
    %70 = arith.divf %66, %69 : vector<8x8xf32>
    %cst_51 = arith.constant dense<0.000000e+00> : vector<8x16xf32>
    %71 = tpu.matmul %70, %60, %cst_51 {dimension_numbers = #tpu.dot_dimension_numbers<[1], [0], [0], [1], [0, 0, 1, 1], [], []>} : vector<8x8xf32>, vector<8x16xf32>, vector<8x16xf32> -> vector<8x16xf32>
    %c1_52 = arith.constant 1 : index
    %c0_53 = arith.constant 0 : index
    %c0_54 = arith.constant 0 : index
    %72 = vector.load %arg2[%c1_52, %c0_53, %c0_54] : memref<4x16x32xf32, #tpu.memory_space<vmem>>, vector<1x16x32xf32>
    %73 = vector.shape_cast %72 : vector<1x16x32xf32> to vector<16x32xf32>
    %cst_55 = arith.constant dense<0.000000e+00> : vector<8x32xf32>
    %74 = tpu.matmul %71, %73, %cst_55 {dimension_numbers = #tpu.dot_dimension_numbers<[1], [0], [0], [1], [0, 0, 1, 1], [], []>} : vector<8x16xf32>, vector<16x32xf32>, vector<8x32xf32> -> vector<8x32xf32>
    %75 = arith.addf %51, %74 : vector<8x32xf32>
    %c0_56 = arith.constant 0 : index
    %c2_57 = arith.constant 2 : index
    %c0_58 = arith.constant 0 : index
    %c0_59 = arith.constant 0 : index
    %76 = vector.load %arg1[%c0_56, %c2_57, %c0_58, %c0_59] : memref<3x4x32x16xf32, #tpu.memory_space<vmem>>, vector<1x1x32x16xf32>
    %77 = vector.shape_cast %76 : vector<1x1x32x16xf32> to vector<32x16xf32>
    %c1_60 = arith.constant 1 : index
    %c2_61 = arith.constant 2 : index
    %c0_62 = arith.constant 0 : index
    %c0_63 = arith.constant 0 : index
    %78 = vector.load %arg1[%c1_60, %c2_61, %c0_62, %c0_63] : memref<3x4x32x16xf32, #tpu.memory_space<vmem>>, vector<1x1x32x16xf32>
    %79 = vector.shape_cast %78 : vector<1x1x32x16xf32> to vector<32x16xf32>
    %c2_64 = arith.constant 2 : index
    %c2_65 = arith.constant 2 : index
    %c0_66 = arith.constant 0 : index
    %c0_67 = arith.constant 0 : index
    %80 = vector.load %arg1[%c2_64, %c2_65, %c0_66, %c0_67] : memref<3x4x32x16xf32, #tpu.memory_space<vmem>>, vector<1x1x32x16xf32>
    %81 = vector.shape_cast %80 : vector<1x1x32x16xf32> to vector<32x16xf32>
    %cst_68 = arith.constant dense<0.000000e+00> : vector<8x16xf32>
    %82 = tpu.matmul %26, %77, %cst_68 {dimension_numbers = #tpu.dot_dimension_numbers<[1], [0], [0], [1], [0, 0, 1, 1], [], []>} : vector<8x32xf32>, vector<32x16xf32>, vector<8x16xf32> -> vector<8x16xf32>
    %cst_69 = arith.constant dense<0.000000e+00> : vector<8x16xf32>
    %83 = tpu.matmul %26, %79, %cst_69 {dimension_numbers = #tpu.dot_dimension_numbers<[1], [0], [0], [1], [0, 0, 1, 1], [], []>} : vector<8x32xf32>, vector<32x16xf32>, vector<8x16xf32> -> vector<8x16xf32>
    %cst_70 = arith.constant dense<0.000000e+00> : vector<8x16xf32>
    %84 = tpu.matmul %26, %81, %cst_70 {dimension_numbers = #tpu.dot_dimension_numbers<[1], [0], [0], [1], [0, 0, 1, 1], [], []>} : vector<8x32xf32>, vector<32x16xf32>, vector<8x16xf32> -> vector<8x16xf32>
    %cst_71 = arith.constant dense<0.000000e+00> : vector<8x8xf32>
    %85 = tpu.matmul %82, %83, %cst_71 {dimension_numbers = #tpu.dot_dimension_numbers<[1], [1], [0], [0], [0, 0, 1, 0], [], []>} : vector<8x16xf32>, vector<8x16xf32>, vector<8x8xf32> -> vector<8x8xf32>
    %cst_72 = arith.constant dense<0xFF800000> : vector<8xf32>
    %86 = vector.multi_reduction <maximumf>, %85, %cst_72 [1] : vector<8x8xf32> to vector<8xf32>
    %87 = vector.shape_cast %86 : vector<8xf32> to vector<8x1xf32>
    %88 = vector.broadcast %87 : vector<8x1xf32> to vector<8x8xf32>
    %89 = arith.subf %85, %88 : vector<8x8xf32>
    %90 = math.exp %89 : vector<8x8xf32>
    %cst_73 = arith.constant dense<0.000000e+00> : vector<8xf32>
    %91 = vector.multi_reduction <add>, %90, %cst_73 [1] : vector<8x8xf32> to vector<8xf32>
    %92 = vector.shape_cast %91 : vector<8xf32> to vector<8x1xf32>
    %93 = vector.broadcast %92 : vector<8x1xf32> to vector<8x8xf32>
    %94 = arith.divf %90, %93 : vector<8x8xf32>
    %cst_74 = arith.constant dense<0.000000e+00> : vector<8x16xf32>
    %95 = tpu.matmul %94, %84, %cst_74 {dimension_numbers = #tpu.dot_dimension_numbers<[1], [0], [0], [1], [0, 0, 1, 1], [], []>} : vector<8x8xf32>, vector<8x16xf32>, vector<8x16xf32> -> vector<8x16xf32>
    %c2_75 = arith.constant 2 : index
    %c0_76 = arith.constant 0 : index
    %c0_77 = arith.constant 0 : index
    %96 = vector.load %arg2[%c2_75, %c0_76, %c0_77] : memref<4x16x32xf32, #tpu.memory_space<vmem>>, vector<1x16x32xf32>
    %97 = vector.shape_cast %96 : vector<1x16x32xf32> to vector<16x32xf32>
    %cst_78 = arith.constant dense<0.000000e+00> : vector<8x32xf32>
    %98 = tpu.matmul %95, %97, %cst_78 {dimension_numbers = #tpu.dot_dimension_numbers<[1], [0], [0], [1], [0, 0, 1, 1], [], []>} : vector<8x16xf32>, vector<16x32xf32>, vector<8x32xf32> -> vector<8x32xf32>
    %99 = arith.addf %75, %98 : vector<8x32xf32>
    %c0_79 = arith.constant 0 : index
    %c3 = arith.constant 3 : index
    %c0_80 = arith.constant 0 : index
    %c0_81 = arith.constant 0 : index
    %100 = vector.load %arg1[%c0_79, %c3, %c0_80, %c0_81] : memref<3x4x32x16xf32, #tpu.memory_space<vmem>>, vector<1x1x32x16xf32>
    %101 = vector.shape_cast %100 : vector<1x1x32x16xf32> to vector<32x16xf32>
    %c1_82 = arith.constant 1 : index
    %c3_83 = arith.constant 3 : index
    %c0_84 = arith.constant 0 : index
    %c0_85 = arith.constant 0 : index
    %102 = vector.load %arg1[%c1_82, %c3_83, %c0_84, %c0_85] : memref<3x4x32x16xf32, #tpu.memory_space<vmem>>, vector<1x1x32x16xf32>
    %103 = vector.shape_cast %102 : vector<1x1x32x16xf32> to vector<32x16xf32>
    %c2_86 = arith.constant 2 : index
    %c3_87 = arith.constant 3 : index
    %c0_88 = arith.constant 0 : index
    %c0_89 = arith.constant 0 : index
    %104 = vector.load %arg1[%c2_86, %c3_87, %c0_88, %c0_89] : memref<3x4x32x16xf32, #tpu.memory_space<vmem>>, vector<1x1x32x16xf32>
    %105 = vector.shape_cast %104 : vector<1x1x32x16xf32> to vector<32x16xf32>
    %cst_90 = arith.constant dense<0.000000e+00> : vector<8x16xf32>
    %106 = tpu.matmul %26, %101, %cst_90 {dimension_numbers = #tpu.dot_dimension_numbers<[1], [0], [0], [1], [0, 0, 1, 1], [], []>} : vector<8x32xf32>, vector<32x16xf32>, vector<8x16xf32> -> vector<8x16xf32>
    %cst_91 = arith.constant dense<0.000000e+00> : vector<8x16xf32>
    %107 = tpu.matmul %26, %103, %cst_91 {dimension_numbers = #tpu.dot_dimension_numbers<[1], [0], [0], [1], [0, 0, 1, 1], [], []>} : vector<8x32xf32>, vector<32x16xf32>, vector<8x16xf32> -> vector<8x16xf32>
    %cst_92 = arith.constant dense<0.000000e+00> : vector<8x16xf32>
    %108 = tpu.matmul %26, %105, %cst_92 {dimension_numbers = #tpu.dot_dimension_numbers<[1], [0], [0], [1], [0, 0, 1, 1], [], []>} : vector<8x32xf32>, vector<32x16xf32>, vector<8x16xf32> -> vector<8x16xf32>
    %cst_93 = arith.constant dense<0.000000e+00> : vector<8x8xf32>
    %109 = tpu.matmul %106, %107, %cst_93 {dimension_numbers = #tpu.dot_dimension_numbers<[1], [1], [0], [0], [0, 0, 1, 0], [], []>} : vector<8x16xf32>, vector<8x16xf32>, vector<8x8xf32> -> vector<8x8xf32>
    %cst_94 = arith.constant dense<0xFF800000> : vector<8xf32>
    %110 = vector.multi_reduction <maximumf>, %109, %cst_94 [1] : vector<8x8xf32> to vector<8xf32>
    %111 = vector.shape_cast %110 : vector<8xf32> to vector<8x1xf32>
    %112 = vector.broadcast %111 : vector<8x1xf32> to vector<8x8xf32>
    %113 = arith.subf %109, %112 : vector<8x8xf32>
    %114 = math.exp %113 : vector<8x8xf32>
    %cst_95 = arith.constant dense<0.000000e+00> : vector<8xf32>
    %115 = vector.multi_reduction <add>, %114, %cst_95 [1] : vector<8x8xf32> to vector<8xf32>
    %116 = vector.shape_cast %115 : vector<8xf32> to vector<8x1xf32>
    %117 = vector.broadcast %116 : vector<8x1xf32> to vector<8x8xf32>
    %118 = arith.divf %114, %117 : vector<8x8xf32>
    %cst_96 = arith.constant dense<0.000000e+00> : vector<8x16xf32>
    %119 = tpu.matmul %118, %108, %cst_96 {dimension_numbers = #tpu.dot_dimension_numbers<[1], [0], [0], [1], [0, 0, 1, 1], [], []>} : vector<8x8xf32>, vector<8x16xf32>, vector<8x16xf32> -> vector<8x16xf32>
    %c3_97 = arith.constant 3 : index
    %c0_98 = arith.constant 0 : index
    %c0_99 = arith.constant 0 : index
    %120 = vector.load %arg2[%c3_97, %c0_98, %c0_99] : memref<4x16x32xf32, #tpu.memory_space<vmem>>, vector<1x16x32xf32>
    %121 = vector.shape_cast %120 : vector<1x16x32xf32> to vector<16x32xf32>
    %cst_100 = arith.constant dense<0.000000e+00> : vector<8x32xf32>
    %122 = tpu.matmul %119, %121, %cst_100 {dimension_numbers = #tpu.dot_dimension_numbers<[1], [0], [0], [1], [0, 0, 1, 1], [], []>} : vector<8x16xf32>, vector<16x32xf32>, vector<8x32xf32> -> vector<8x32xf32>
    %123 = arith.addf %99, %122 : vector<8x32xf32>
    %124 = vector.broadcast %3 : vector<1x32xf32> to vector<8x32xf32>
    %125 = arith.addf %123, %124 : vector<8x32xf32>
    %c0_101 = arith.constant 0 : index
    %c0_102 = arith.constant 0 : index
    %126 = vector.load %arg4[%c0_101, %c0_102] : memref<16x32xf32, #tpu.memory_space<vmem>>, vector<8x32xf32>
    tpu.vector_store %arg4[%c0_101, %c0_102], %125 {strides = array<i32>} : memref<16x32xf32, #tpu.memory_space<vmem>>, vector<8x32xf32>,
    %127 = vector.extract_strided_slice %25 {offsets = [8, 0], sizes = [8, 32], strides = [1, 1]} : vector<16x32xf32> to vector<8x32xf32>
    %cst_103 = arith.constant 0.000000e+00 : f32
    %128 = vector.broadcast %cst_103 : f32 to vector<8x32xf32>
    %c0_104 = arith.constant 0 : index
    %c0_105 = arith.constant 0 : index
    %c0_106 = arith.constant 0 : index
    %c0_107 = arith.constant 0 : index
    %129 = vector.load %arg1[%c0_104, %c0_105, %c0_106, %c0_107] : memref<3x4x32x16xf32, #tpu.memory_space<vmem>>, vector<1x1x32x16xf32>
    %130 = vector.shape_cast %129 : vector<1x1x32x16xf32> to vector<32x16xf32>
    %c1_108 = arith.constant 1 : index
    %c0_109 = arith.constant 0 : index
    %c0_110 = arith.constant 0 : index
    %c0_111 = arith.constant 0 : index
    %131 = vector.load %arg1[%c1_108, %c0_109, %c0_110, %c0_111] : memref<3x4x32x16xf32, #tpu.memory_space<vmem>>, vector<1x1x32x16xf32>
    %132 = vector.shape_cast %131 : vector<1x1x32x16xf32> to vector<32x16xf32>
    %c2_112 = arith.constant 2 : index
    %c0_113 = arith.constant 0 : index
    %c0_114 = arith.constant 0 : index
    %c0_115 = arith.constant 0 : index
    %133 = vector.load %arg1[%c2_112, %c0_113, %c0_114, %c0_115] : memref<3x4x32x16xf32, #tpu.memory_space<vmem>>, vector<1x1x32x16xf32>
    %134 = vector.shape_cast %133 : vector<1x1x32x16xf32> to vector<32x16xf32>
    %cst_116 = arith.constant dense<0.000000e+00> : vector<8x16xf32>
    %135 = tpu.matmul %127, %130, %cst_116 {dimension_numbers = #tpu.dot_dimension_numbers<[1], [0], [0], [1], [0, 0, 1, 1], [], []>} : vector<8x32xf32>, vector<32x16xf32>, vector<8x16xf32> -> vector<8x16xf32>
    %cst_117 = arith.constant dense<0.000000e+00> : vector<8x16xf32>
    %136 = tpu.matmul %127, %132, %cst_117 {dimension_numbers = #tpu.dot_dimension_numbers<[1], [0], [0], [1], [0, 0, 1, 1], [], []>} : vector<8x32xf32>, vector<32x16xf32>, vector<8x16xf32> -> vector<8x16xf32>
    %cst_118 = arith.constant dense<0.000000e+00> : vector<8x16xf32>
    %137 = tpu.matmul %127, %134, %cst_118 {dimension_numbers = #tpu.dot_dimension_numbers<[1], [0], [0], [1], [0, 0, 1, 1], [], []>} : vector<8x32xf32>, vector<32x16xf32>, vector<8x16xf32> -> vector<8x16xf32>
    %cst_119 = arith.constant dense<0.000000e+00> : vector<8x8xf32>
    %138 = tpu.matmul %135, %136, %cst_119 {dimension_numbers = #tpu.dot_dimension_numbers<[1], [1], [0], [0], [0, 0, 1, 0], [], []>} : vector<8x16xf32>, vector<8x16xf32>, vector<8x8xf32> -> vector<8x8xf32>
    %cst_120 = arith.constant dense<0xFF800000> : vector<8xf32>
    %139 = vector.multi_reduction <maximumf>, %138, %cst_120 [1] : vector<8x8xf32> to vector<8xf32>
    %140 = vector.shape_cast %139 : vector<8xf32> to vector<8x1xf32>
    %141 = vector.broadcast %140 : vector<8x1xf32> to vector<8x8xf32>
    %142 = arith.subf %138, %141 : vector<8x8xf32>
    %143 = math.exp %142 : vector<8x8xf32>
    %cst_121 = arith.constant dense<0.000000e+00> : vector<8xf32>
    %144 = vector.multi_reduction <add>, %143, %cst_121 [1] : vector<8x8xf32> to vector<8xf32>
    %145 = vector.shape_cast %144 : vector<8xf32> to vector<8x1xf32>
    %146 = vector.broadcast %145 : vector<8x1xf32> to vector<8x8xf32>
    %147 = arith.divf %143, %146 : vector<8x8xf32>
    %cst_122 = arith.constant dense<0.000000e+00> : vector<8x16xf32>
    %148 = tpu.matmul %147, %137, %cst_122 {dimension_numbers = #tpu.dot_dimension_numbers<[1], [0], [0], [1], [0, 0, 1, 1], [], []>} : vector<8x8xf32>, vector<8x16xf32>, vector<8x16xf32> -> vector<8x16xf32>
    %c0_123 = arith.constant 0 : index
    %c0_124 = arith.constant 0 : index
    %c0_125 = arith.constant 0 : index
    %149 = vector.load %arg2[%c0_123, %c0_124, %c0_125] : memref<4x16x32xf32, #tpu.memory_space<vmem>>, vector<1x16x32xf32>
    %150 = vector.shape_cast %149 : vector<1x16x32xf32> to vector<16x32xf32>
    %cst_126 = arith.constant dense<0.000000e+00> : vector<8x32xf32>
    %151 = tpu.matmul %148, %150, %cst_126 {dimension_numbers = #tpu.dot_dimension_numbers<[1], [0], [0], [1], [0, 0, 1, 1], [], []>} : vector<8x16xf32>, vector<16x32xf32>, vector<8x32xf32> -> vector<8x32xf32>
    %152 = arith.addf %128, %151 : vector<8x32xf32>
    %c0_127 = arith.constant 0 : index
    %c1_128 = arith.constant 1 : index
    %c0_129 = arith.constant 0 : index
    %c0_130 = arith.constant 0 : index
    %153 = vector.load %arg1[%c0_127, %c1_128, %c0_129, %c0_130] : memref<3x4x32x16xf32, #tpu.memory_space<vmem>>, vector<1x1x32x16xf32>
    %154 = vector.shape_cast %153 : vector<1x1x32x16xf32> to vector<32x16xf32>
    %c1_131 = arith.constant 1 : index
    %c1_132 = arith.constant 1 : index
    %c0_133 = arith.constant 0 : index
    %c0_134 = arith.constant 0 : index
    %155 = vector.load %arg1[%c1_131, %c1_132, %c0_133, %c0_134] : memref<3x4x32x16xf32, #tpu.memory_space<vmem>>, vector<1x1x32x16xf32>
    %156 = vector.shape_cast %155 : vector<1x1x32x16xf32> to vector<32x16xf32>
    %c2_135 = arith.constant 2 : index
    %c1_136 = arith.constant 1 : index
    %c0_137 = arith.constant 0 : index
    %c0_138 = arith.constant 0 : index
    %157 = vector.load %arg1[%c2_135, %c1_136, %c0_137, %c0_138] : memref<3x4x32x16xf32, #tpu.memory_space<vmem>>, vector<1x1x32x16xf32>
    %158 = vector.shape_cast %157 : vector<1x1x32x16xf32> to vector<32x16xf32>
    %cst_139 = arith.constant dense<0.000000e+00> : vector<8x16xf32>
    %159 = tpu.matmul %127, %154, %cst_139 {dimension_numbers = #tpu.dot_dimension_numbers<[1], [0], [0], [1], [0, 0, 1, 1], [], []>} : vector<8x32xf32>, vector<32x16xf32>, vector<8x16xf32> -> vector<8x16xf32>
    %cst_140 = arith.constant dense<0.000000e+00> : vector<8x16xf32>
    %160 = tpu.matmul %127, %156, %cst_140 {dimension_numbers = #tpu.dot_dimension_numbers<[1], [0], [0], [1], [0, 0, 1, 1], [], []>} : vector<8x32xf32>, vector<32x16xf32>, vector<8x16xf32> -> vector<8x16xf32>
    %cst_141 = arith.constant dense<0.000000e+00> : vector<8x16xf32>
    %161 = tpu.matmul %127, %158, %cst_141 {dimension_numbers = #tpu.dot_dimension_numbers<[1], [0], [0], [1], [0, 0, 1, 1], [], []>} : vector<8x32xf32>, vector<32x16xf32>, vector<8x16xf32> -> vector<8x16xf32>
    %cst_142 = arith.constant dense<0.000000e+00> : vector<8x8xf32>
    %162 = tpu.matmul %159, %160, %cst_142 {dimension_numbers = #tpu.dot_dimension_numbers<[1], [1], [0], [0], [0, 0, 1, 0], [], []>} : vector<8x16xf32>, vector<8x16xf32>, vector<8x8xf32> -> vector<8x8xf32>
    %cst_143 = arith.constant dense<0xFF800000> : vector<8xf32>
    %163 = vector.multi_reduction <maximumf>, %162, %cst_143 [1] : vector<8x8xf32> to vector<8xf32>
    %164 = vector.shape_cast %163 : vector<8xf32> to vector<8x1xf32>
    %165 = vector.broadcast %164 : vector<8x1xf32> to vector<8x8xf32>
    %166 = arith.subf %162, %165 : vector<8x8xf32>
    %167 = math.exp %166 : vector<8x8xf32>
    %cst_144 = arith.constant dense<0.000000e+00> : vector<8xf32>
    %168 = vector.multi_reduction <add>, %167, %cst_144 [1] : vector<8x8xf32> to vector<8xf32>
    %169 = vector.shape_cast %168 : vector<8xf32> to vector<8x1xf32>
    %170 = vector.broadcast %169 : vector<8x1xf32> to vector<8x8xf32>
    %171 = arith.divf %167, %170 : vector<8x8xf32>
    %cst_145 = arith.constant dense<0.000000e+00> : vector<8x16xf32>
    %172 = tpu.matmul %171, %161, %cst_145 {dimension_numbers = #tpu.dot_dimension_numbers<[1], [0], [0], [1], [0, 0, 1, 1], [], []>} : vector<8x8xf32>, vector<8x16xf32>, vector<8x16xf32> -> vector<8x16xf32>
    %c1_146 = arith.constant 1 : index
    %c0_147 = arith.constant 0 : index
    %c0_148 = arith.constant 0 : index
    %173 = vector.load %arg2[%c1_146, %c0_147, %c0_148] : memref<4x16x32xf32, #tpu.memory_space<vmem>>, vector<1x16x32xf32>
    %174 = vector.shape_cast %173 : vector<1x16x32xf32> to vector<16x32xf32>
    %cst_149 = arith.constant dense<0.000000e+00> : vector<8x32xf32>
    %175 = tpu.matmul %172, %174, %cst_149 {dimension_numbers = #tpu.dot_dimension_numbers<[1], [0], [0], [1], [0, 0, 1, 1], [], []>} : vector<8x16xf32>, vector<16x32xf32>, vector<8x32xf32> -> vector<8x32xf32>
    %176 = arith.addf %152, %175 : vector<8x32xf32>
    %c0_150 = arith.constant 0 : index
    %c2_151 = arith.constant 2 : index
    %c0_152 = arith.constant 0 : index
    %c0_153 = arith.constant 0 : index
    %177 = vector.load %arg1[%c0_150, %c2_151, %c0_152, %c0_153] : memref<3x4x32x16xf32, #tpu.memory_space<vmem>>, vector<1x1x32x16xf32>
    %178 = vector.shape_cast %177 : vector<1x1x32x16xf32> to vector<32x16xf32>
    %c1_154 = arith.constant 1 : index
    %c2_155 = arith.constant 2 : index
    %c0_156 = arith.constant 0 : index
    %c0_157 = arith.constant 0 : index
    %179 = vector.load %arg1[%c1_154, %c2_155, %c0_156, %c0_157] : memref<3x4x32x16xf32, #tpu.memory_space<vmem>>, vector<1x1x32x16xf32>
    %180 = vector.shape_cast %179 : vector<1x1x32x16xf32> to vector<32x16xf32>
    %c2_158 = arith.constant 2 : index
    %c2_159 = arith.constant 2 : index
    %c0_160 = arith.constant 0 : index
    %c0_161 = arith.constant 0 : index
    %181 = vector.load %arg1[%c2_158, %c2_159, %c0_160, %c0_161] : memref<3x4x32x16xf32, #tpu.memory_space<vmem>>, vector<1x1x32x16xf32>
    %182 = vector.shape_cast %181 : vector<1x1x32x16xf32> to vector<32x16xf32>
    %cst_162 = arith.constant dense<0.000000e+00> : vector<8x16xf32>
    %183 = tpu.matmul %127, %178, %cst_162 {dimension_numbers = #tpu.dot_dimension_numbers<[1], [0], [0], [1], [0, 0, 1, 1], [], []>} : vector<8x32xf32>, vector<32x16xf32>, vector<8x16xf32> -> vector<8x16xf32>
    %cst_163 = arith.constant dense<0.000000e+00> : vector<8x16xf32>
    %184 = tpu.matmul %127, %180, %cst_163 {dimension_numbers = #tpu.dot_dimension_numbers<[1], [0], [0], [1], [0, 0, 1, 1], [], []>} : vector<8x32xf32>, vector<32x16xf32>, vector<8x16xf32> -> vector<8x16xf32>
    %cst_164 = arith.constant dense<0.000000e+00> : vector<8x16xf32>
    %185 = tpu.matmul %127, %182, %cst_164 {dimension_numbers = #tpu.dot_dimension_numbers<[1], [0], [0], [1], [0, 0, 1, 1], [], []>} : vector<8x32xf32>, vector<32x16xf32>, vector<8x16xf32> -> vector<8x16xf32>
    %cst_165 = arith.constant dense<0.000000e+00> : vector<8x8xf32>
    %186 = tpu.matmul %183, %184, %cst_165 {dimension_numbers = #tpu.dot_dimension_numbers<[1], [1], [0], [0], [0, 0, 1, 0], [], []>} : vector<8x16xf32>, vector<8x16xf32>, vector<8x8xf32> -> vector<8x8xf32>
    %cst_166 = arith.constant dense<0xFF800000> : vector<8xf32>
    %187 = vector.multi_reduction <maximumf>, %186, %cst_166 [1] : vector<8x8xf32> to vector<8xf32>
    %188 = vector.shape_cast %187 : vector<8xf32> to vector<8x1xf32>
    %189 = vector.broadcast %188 : vector<8x1xf32> to vector<8x8xf32>
    %190 = arith.subf %186, %189 : vector<8x8xf32>
    %191 = math.exp %190 : vector<8x8xf32>
    %cst_167 = arith.constant dense<0.000000e+00> : vector<8xf32>
    %192 = vector.multi_reduction <add>, %191, %cst_167 [1] : vector<8x8xf32> to vector<8xf32>
    %193 = vector.shape_cast %192 : vector<8xf32> to vector<8x1xf32>
    %194 = vector.broadcast %193 : vector<8x1xf32> to vector<8x8xf32>
    %195 = arith.divf %191, %194 : vector<8x8xf32>
    %cst_168 = arith.constant dense<0.000000e+00> : vector<8x16xf32>
    %196 = tpu.matmul %195, %185, %cst_168 {dimension_numbers = #tpu.dot_dimension_numbers<[1], [0], [0], [1], [0, 0, 1, 1], [], []>} : vector<8x8xf32>, vector<8x16xf32>, vector<8x16xf32> -> vector<8x16xf32>
    %c2_169 = arith.constant 2 : index
    %c0_170 = arith.constant 0 : index
    %c0_171 = arith.constant 0 : index
    %197 = vector.load %arg2[%c2_169, %c0_170, %c0_171] : memref<4x16x32xf32, #tpu.memory_space<vmem>>, vector<1x16x32xf32>
    %198 = vector.shape_cast %197 : vector<1x16x32xf32> to vector<16x32xf32>
    %cst_172 = arith.constant dense<0.000000e+00> : vector<8x32xf32>
    %199 = tpu.matmul %196, %198, %cst_172 {dimension_numbers = #tpu.dot_dimension_numbers<[1], [0], [0], [1], [0, 0, 1, 1], [], []>} : vector<8x16xf32>, vector<16x32xf32>, vector<8x32xf32> -> vector<8x32xf32>
    %200 = arith.addf %176, %199 : vector<8x32xf32>
    %c0_173 = arith.constant 0 : index
    %c3_174 = arith.constant 3 : index
    %c0_175 = arith.constant 0 : index
    %c0_176 = arith.constant 0 : index
    %201 = vector.load %arg1[%c0_173, %c3_174, %c0_175, %c0_176] : memref<3x4x32x16xf32, #tpu.memory_space<vmem>>, vector<1x1x32x16xf32>
    %202 = vector.shape_cast %201 : vector<1x1x32x16xf32> to vector<32x16xf32>
    %c1_177 = arith.constant 1 : index
    %c3_178 = arith.constant 3 : index
    %c0_179 = arith.constant 0 : index
    %c0_180 = arith.constant 0 : index
    %203 = vector.load %arg1[%c1_177, %c3_178, %c0_179, %c0_180] : memref<3x4x32x16xf32, #tpu.memory_space<vmem>>, vector<1x1x32x16xf32>
    %204 = vector.shape_cast %203 : vector<1x1x32x16xf32> to vector<32x16xf32>
    %c2_181 = arith.constant 2 : index
    %c3_182 = arith.constant 3 : index
    %c0_183 = arith.constant 0 : index
    %c0_184 = arith.constant 0 : index
    %205 = vector.load %arg1[%c2_181, %c3_182, %c0_183, %c0_184] : memref<3x4x32x16xf32, #tpu.memory_space<vmem>>, vector<1x1x32x16xf32>
    %206 = vector.shape_cast %205 : vector<1x1x32x16xf32> to vector<32x16xf32>
    %cst_185 = arith.constant dense<0.000000e+00> : vector<8x16xf32>
    %207 = tpu.matmul %127, %202, %cst_185 {dimension_numbers = #tpu.dot_dimension_numbers<[1], [0], [0], [1], [0, 0, 1, 1], [], []>} : vector<8x32xf32>, vector<32x16xf32>, vector<8x16xf32> -> vector<8x16xf32>
    %cst_186 = arith.constant dense<0.000000e+00> : vector<8x16xf32>
    %208 = tpu.matmul %127, %204, %cst_186 {dimension_numbers = #tpu.dot_dimension_numbers<[1], [0], [0], [1], [0, 0, 1, 1], [], []>} : vector<8x32xf32>, vector<32x16xf32>, vector<8x16xf32> -> vector<8x16xf32>
    %cst_187 = arith.constant dense<0.000000e+00> : vector<8x16xf32>
    %209 = tpu.matmul %127, %206, %cst_187 {dimension_numbers = #tpu.dot_dimension_numbers<[1], [0], [0], [1], [0, 0, 1, 1], [], []>} : vector<8x32xf32>, vector<32x16xf32>, vector<8x16xf32> -> vector<8x16xf32>
    %cst_188 = arith.constant dense<0.000000e+00> : vector<8x8xf32>
    %210 = tpu.matmul %207, %208, %cst_188 {dimension_numbers = #tpu.dot_dimension_numbers<[1], [1], [0], [0], [0, 0, 1, 0], [], []>} : vector<8x16xf32>, vector<8x16xf32>, vector<8x8xf32> -> vector<8x8xf32>
    %cst_189 = arith.constant dense<0xFF800000> : vector<8xf32>
    %211 = vector.multi_reduction <maximumf>, %210, %cst_189 [1] : vector<8x8xf32> to vector<8xf32>
    %212 = vector.shape_cast %211 : vector<8xf32> to vector<8x1xf32>
    %213 = vector.broadcast %212 : vector<8x1xf32> to vector<8x8xf32>
    %214 = arith.subf %210, %213 : vector<8x8xf32>
    %215 = math.exp %214 : vector<8x8xf32>
    %cst_190 = arith.constant dense<0.000000e+00> : vector<8xf32>
    %216 = vector.multi_reduction <add>, %215, %cst_190 [1] : vector<8x8xf32> to vector<8xf32>
    %217 = vector.shape_cast %216 : vector<8xf32> to vector<8x1xf32>
    %218 = vector.broadcast %217 : vector<8x1xf32> to vector<8x8xf32>
    %219 = arith.divf %215, %218 : vector<8x8xf32>
    %cst_191 = arith.constant dense<0.000000e+00> : vector<8x16xf32>
    %220 = tpu.matmul %219, %209, %cst_191 {dimension_numbers = #tpu.dot_dimension_numbers<[1], [0], [0], [1], [0, 0, 1, 1], [], []>} : vector<8x8xf32>, vector<8x16xf32>, vector<8x16xf32> -> vector<8x16xf32>
    %c3_192 = arith.constant 3 : index
    %c0_193 = arith.constant 0 : index
    %c0_194 = arith.constant 0 : index
    %221 = vector.load %arg2[%c3_192, %c0_193, %c0_194] : memref<4x16x32xf32, #tpu.memory_space<vmem>>, vector<1x16x32xf32>
    %222 = vector.shape_cast %221 : vector<1x16x32xf32> to vector<16x32xf32>
    %cst_195 = arith.constant dense<0.000000e+00> : vector<8x32xf32>
    %223 = tpu.matmul %220, %222, %cst_195 {dimension_numbers = #tpu.dot_dimension_numbers<[1], [0], [0], [1], [0, 0, 1, 1], [], []>} : vector<8x16xf32>, vector<16x32xf32>, vector<8x32xf32> -> vector<8x32xf32>
    %224 = arith.addf %200, %223 : vector<8x32xf32>
    %225 = vector.broadcast %3 : vector<1x32xf32> to vector<8x32xf32>
    %226 = arith.addf %224, %225 : vector<8x32xf32>
    %c8 = arith.constant 8 : index
    %c0_196 = arith.constant 0 : index
    %227 = vector.load %arg4[%c8, %c0_196] : memref<16x32xf32, #tpu.memory_space<vmem>>, vector<8x32xf32>
    tpu.vector_store %arg4[%c8, %c0_196], %226 {strides = array<i32>} : memref<16x32xf32, #tpu.memory_space<vmem>>, vector<8x32xf32>,
    return
  }
}

</mosaic_0001>

<bundles_post_ra>
// kernel: attention_forward.1
= control target key start
LH: loop header
LB: loop body
LE: loop exit
PB: predicated region body
PF: predicated region fallthrough
CT: control target
= control target key end

     0   :  { %vm23_vm0 = vcmask 261120   ;;  %s5364_s0 = inlined_call_operand.vmem [shape: f32[16,32], index: 0, kind: input, shape index: {}]   ;;  %s5365_s1 = inlined_call_operand.vmem [shape: f32[3,4,32,16], index: 1, kind: input, shape index: {}]   ;;  %s5366_s2 = inlined_call_operand.vmem [shape: f32[4,16,32], index: 2, kind: input, shape index: {}]   ;;  %s5367_s3 = inlined_call_operand.vmem [shape: f32[3,32], index: 3, kind: input, shape index: {}]   ;;  %s5368_s4 = inlined_call_operand.hbm [shape: f32[16,32], index: 4, kind: output, shape index: {}]  }
   0x1   :  { %v18_v0 = vld [vmem:[%s5364_s0] sm:$0xff] }
   0x2   :  { %9 = vsyncpa [#allocation3], 0  ;;  %v24_v1 = vsel %vm23_vm0, %v18_v0, 0.0  ;;  %v5375_v7 = vmov 0.0   ;;  %v4606_v8 = vld [vmem:[%s5365_s1 + $0x18] sm:$0xff]  ;;  %v4620_v10 = vld [vmem:[%s5365_s1 + $0x10] sm:$0xff] }
   0x3   :  { %25 = vadd.xlane.f32.xlu0 %v24_v1  ;;  %4104 = vmatprep.subr.mxu0 %v5375_v7  ;;  %v4613_v9 = vld [vmem:[%s5365_s1 + $0x98] sm:$0xff]  ;;  %v4627_v11 = vld [vmem:[%s5365_s1 + $0x90] sm:$0xff]  ;;  %v4634_v12 = vld [vmem:[%s5365_s1 + $0x8] sm:$0xff]  ;;  %vm4568_vm1 = vmmov 0   ;;  %vm290_vm2 = vcmask 130048   ;;  %vm367_vm3 = vcmask 64512  }
   0x4   :  { %4115 = vmatprep.subr.mxu1 %v5375_v7  ;;  %4105 = vmatpush3.msra.mxu0 %v4606_v8  ;;  %v4641_v13 = vld [vmem:[%s5365_s1 + $0x88] sm:$0xff]  ;;  %v4648_v14 = vld [vmem:[%s5365_s1] sm:$0xff]  ;;  %v4681_v25 = vld [vmem:[%s5365_s1 + $0x118] sm:$0xff] }
   0x5   :  { %4106 = vmatprep.subr.mxu0 %v5375_v7  ;;  %4116 = vmatpush3.msra.mxu1 %v4613_v9  ;;  %v4655_v15 = vld [vmem:[%s5365_s1 + $0x80] sm:$0xff]  ;;  %v4690_v26 = vld [vmem:[%s5365_s1 + $0x110] sm:$0xff]  ;;  %v4699_v27 = vld [vmem:[%s5365_s1 + $0x108] sm:$0xff] }
   0x6   :  { %4107 = vmatpush3.msra.mxu0 %v4620_v10  ;;  %4117 = vmatprep.subr.mxu1 %v5375_v7  ;;  %v4667_v20 = vld [vmem:[%s5367_s3] ss:$0 sm:$0xff]  ;;  %v4672_v22 = vld [vmem:[%s5367_s3 + $0x1] ss:$0 sm:$0xff]  ;;  %v4715_v29 = vld [vmem:[%s5365_s1 + $0x38] sm:$0xff] }
   0x7   :  { %4108 = vmatprep.subr.mxu0 %v5375_v7  ;;  %4118 = vmatpush3.msra.mxu1 %v4627_v11  ;;  %v4708_v28 = vld [vmem:[%s5365_s1 + $0x100] sm:$0xff]  ;;  %v4724_v30 = vld [vmem:[%s5365_s1 + $0x30] sm:$0xff]  ;;  %v4733_v31 = vld [vmem:[%s5365_s1 + $0x28] sm:$0xff] }
   0x8   :  { %4109 = vmatpush3.msra.mxu0 %v4634_v12  ;;  %4119 = vmatprep.subr.mxu1 %v5375_v7  ;;  %v4740_v32 = vld [vmem:[%s5365_s1 + $0x20] sm:$0xff]  ;;  %v4747_v33 = vld [vmem:[%s5365_s1 + $0x138] sm:$0xff]  ;;  %v4756_v34 = vld [vmem:[%s5365_s1 + $0x130] sm:$0xff] }
   0x9   :  { %4110 = vmatprep.subr.mxu0 %v5375_v7  ;;  %4120 = vmatpush3.msra.mxu1 %v4641_v13  ;;  %v4765_v35 = vld [vmem:[%s5365_s1 + $0x128] sm:$0xff]  ;;  %v4772_v36 = vld [vmem:[%s5365_s1 + $0x120] sm:$0xff]  ;;  %v4793_v58 = vld [vmem:[%s5365_s1 + $0xb8] sm:$0xff] }
   0xa   :  { %4111 = vmatpush3.msra.mxu0 %v4648_v14  ;;  %4121 = vmatprep.subr.mxu1 %v5375_v7  ;;  %v4799_v59 = vld [vmem:[%s5365_s1 + $0xb0] sm:$0xff]  ;;  %v4808_v60 = vld [vmem:[%s5365_s1 + $0xa8] sm:$0xff]  ;;  %v4815_v61 = vld [vmem:[%s5365_s1 + $0xa0] sm:$0xff] }
   0xb   :  { %4112 = vmatprep.mubr.msk.f32.mxu0 %vm4568_vm1, %v5375_v7  ;;  %4122 = vmatpush3.msra.mxu1 %v4655_v15 }
   0xc   :  { %4123 = vmatprep.mubr.msk.f32.mxu1 %vm4568_vm1, %v5375_v7  ;;  %4126 = vmatprep.subr.mxu0 %v5375_v7 }
   0xd   :  { %4137 = vmatprep.subr.mxu1 %v5375_v7 }
  0x8c   :  { %v26_v2 = vpop.xlane.xlu0 %25 }
  0x8d   :  { %v31_v3 = vmul.f32 0.03125, %v26_v2 }
  0x8f   :  { %v33_v4 = vsub.f32 %v18_v0, %v31_v3 }
  0x91   :  { %v35_v5 = vmul.f32 %v33_v4, %v33_v4 }
  0x93   :  { %v37_v6 = vsel %vm23_vm0, %v35_v5, 0.0 }
  0x94   :  { %38 = vadd.xlane.f32.xlu0 %v37_v6 }
 0x11d   :  { %v39_v16 = vpop.xlane.xlu0 %38 }
 0x11e   :  { %v43_v17 = vmul.f32 0.03125, %v39_v16 }
 0x120   :  { %v45_v18 = vadd.f32 1e-05, %v43_v17 }
 0x122   :  { %4509 = vrsqrt.f32 %v45_v18 }
 0x12f   :  { %v4510_v19 = vpop.eup %4509 }
 0x130   :  { %v49_v21 = vmul.f32 %v4510_v19, %v33_v4  ;;  %v4836_v19 = vld [vmem:[%s5366_s2 + $0x18] sm:$0xff] }
 0x132   :  { %v55_v23 = vmul.f32 %v4667_v20, %v49_v21  ;;  %v4841_v21 = vld [vmem:[%s5366_s2 + $0x10] sm:$0xff] }
 0x134   :  { %v4676_v24 = vadd.f32 %v4672_v22, %v55_v23 }
 0x136   :  { %4113 = vmatmul.mubr.msk.f32.vlgmr.msra.gmra.mxu0 %vm23_vm0, %v4676_v24  ;;  %4124 = vmatmul.mubr.msk.f32.vlgmr.msra.gmra.mxu1 %vm23_vm0, %v4676_v24 }
 0x137   :  { %4127 = vmatpush3.msra.mxu0 %v4681_v25  ;;  %4134 = vmatprep.mubr.msk.f32.mxu0 %vm4568_vm1, %v5375_v7 }
 0x138   :  { %4128 = vmatprep.subr.mxu0 %v5375_v7  ;;  %4139 = vmatprep.mubr.msk.f32.mxu1 %vm4568_vm1, %v5375_v7 }
 0x139   :  { %4129 = vmatpush3.msra.mxu0 %v4690_v26 }
 0x13a   :  { %4130 = vmatprep.subr.mxu0 %v5375_v7 }
 0x13b   :  { %4131 = vmatpush3.msra.mxu0 %v4699_v27 }
 0x13c   :  { %4132 = vmatprep.subr.mxu0 %v5375_v7 }
 0x13d   :  { %4133 = vmatpush3.msra.mxu0 %v4708_v28 }
 0x13e   :  { %4135 = vmatmul.mubr.msk.f32.vlgmr.msra.gmra.mxu0 %vm23_vm0, %v4676_v24  ;;  %4147 = vmatprep.subr.mxu0 %v5375_v7 }
 0x13f   :  { %4148 = vmatpush3.msra.mxu0 %v4715_v29  ;;  %4155 = vmatprep.mubr.msk.f32.mxu0 %vm4568_vm1, %v5375_v7 }
 0x140   :  { %4149 = vmatprep.subr.mxu0 %v5375_v7 }
 0x141   :  { %4150 = vmatpush3.msra.mxu0 %v4724_v30 }
 0x142   :  { %4151 = vmatprep.subr.mxu0 %v5375_v7 }
 0x143   :  { %4152 = vmatpush3.msra.mxu0 %v4733_v31 }
 0x144   :  { %4153 = vmatprep.subr.mxu0 %v5375_v7 }
 0x145   :  { %4154 = vmatpush3.msra.mxu0 %v4740_v32 }
 0x146   :  { %4156 = vmatmul.mubr.msk.f32.vlgmr.msra.gmra.mxu0 %vm23_vm0, %v4676_v24  ;;  %4169 = vmatprep.subr.mxu0 %v5375_v7 }
 0x147   :  { %4170 = vmatpush3.msra.mxu0 %v4747_v33  ;;  %4177 = vmatprep.mubr.msk.f32.mxu0 %vm4568_vm1, %v5375_v7 }
 0x148   :  { %4171 = vmatprep.subr.mxu0 %v5375_v7 }
 0x149   :  { %4172 = vmatpush3.msra.mxu0 %v4756_v34 }
 0x14a   :  { %4173 = vmatprep.subr.mxu0 %v5375_v7 }
 0x14b   :  { %4174 = vmatpush3.msra.mxu0 %v4765_v35 }
 0x14c   :  { %4175 = vmatprep.subr.mxu0 %v5375_v7 }
 0x14d   :  { %4176 = vmatpush3.msra.mxu0 %v4772_v36 }
 0x14e   :  { %4178 = vmatmul.mubr.msk.f32.vlgmr.msra.gmra.mxu0 %vm23_vm0, %v4676_v24  ;;  %4190 = vmatprep.subr.mxu0 %v5375_v7 }
 0x14f   :  { %4194 = vmatprep.mubr.msk.f32.mxu0 %vm4568_vm1, %v5375_v7  ;;  %4191 = vmatpush3.msra.mxu0 %v4836_v19 }
 0x150   :  { %4192 = vmatprep.subr.mxu0 %v5375_v7 }
 0x151   :  { %4193 = vmatpush3.msra.mxu0 %v4841_v21 }
 0x152   :  { %4204 = vmatprep.subr.mxu0 %v5375_v7 }
 0x1f6   :  { %v146_v37 = vpop.f32.mrf.mxu0  ;;  %v216_v38 = vpop.f32.mrf.mxu1 }
 0x1f7   :  { %4138 = vmatpush3.xpose.msk.msra.mxu1 %vm290_vm2, %v216_v38 }
 0x1f8   :  { %v4114_v39 = vpop.f32.mrf.mxu0  ;;  %v4125_v40 = vpop.f32.mrf.mxu1  ;;  %4142 = vmatprep.subr.mxu1 %v5375_v7 }
 0x1f9   :  { %v4850_v39 = vld [vmem:[%s5366_s2 + $0x8] sm:$0xff]  ;;  %v4856_v40 = vld [vmem:[%s5366_s2] sm:$0xff] }
 0x1fa   :  { %4140 = vmatmul.mubr.msk.f32.vlgmr.msra.gmra.mxu1 %vm290_vm2, %v146_v37 }
 0x1fb   :  { %4144 = vmatprep.mubr.msk.f32.mxu1 %vm4568_vm1, %v5375_v7 }
 0x1fe   :  { %v286_v41 = vpop.f32.mrf.mxu0 }
 0x1ff   :  { %4143 = vmatpush3.msra.mxu1 %v286_v41  ;;  %v4865_v41 = vld [vmem:[%s5365_s1 + $0xd8] sm:$0xff] }
 0x200   :  { %v4136_v42 = vpop.f32.mrf.mxu0  ;;  %4158 = vmatprep.subr.mxu1 %v5375_v7 }
 0x201   :  { %v4873_v42 = vld [vmem:[%s5365_s1 + $0xd0] sm:$0xff] }
 0x206   :  { %v535_v43 = vpop.f32.mrf.mxu0 }
 0x208   :  { %v4157_v44 = vpop.f32.mrf.mxu0 }
 0x209   :  { %v4889_v44 = vld [vmem:[%s5365_s1 + $0xc0] sm:$0xff] }
 0x20e   :  { %v675_v45 = vpop.f32.mrf.mxu0 }
 0x210   :  { %v4179_v46 = vpop.f32.mrf.mxu0 }
 0x2ba   :  { %v363_v47 = vpop.f32.mrf.mxu1 }
 0x2bb   :  { %v368_v48 = vsel %vm367_vm3, %v363_v47, -inf }
 0x2bc   :  { %369 = vmax.xlane.f32.xlu1 %v368_v48  ;;  %v4141_v49 = vpop.f32.mrf.mxu1 }
 0x2bd   :  { %v4917_v49 = vld [vmem:[%s5365_s1 + $0x48] sm:$0xff] }
 0x345   :  { %v370_v50 = vpop.xlane.xlu1 %369 }
 0x346   :  { %v371_v51 = vsub.f32 %v363_v47, %v370_v50  ;;  %v4908_v47 = vld [vmem:[%s5365_s1 + $0x50] sm:$0xff] }
 0x348   :  { %v372_v52 = vmul.f32 1.442695, %v371_v51  ;;  %v4926_v51 = vld [vmem:[%s5365_s1 + $0x40] sm:$0xff] }
 0x34a   :  { %4511 = vpow2.f32 %v372_v52 }
 0x357   :  { %v4512_v53 = vpop.eup %4511 }
 0x358   :  { %v374_v54 = vsel %vm367_vm3, %v4512_v53, 0.0 }
 0x359   :  { %375 = vadd.xlane.f32.xlu1 %v374_v54  ;;  %v4942_v54 = vld [vmem:[%s5365_s1 + $0x150] sm:$0xff] }
 0x3e2   :  { %v376_v55 = vpop.xlane.xlu1 %375 }
 0x3e3   :  { %4513 = vrcp.f32 %v376_v55  ;;  %v4951_v55 = vld [vmem:[%s5365_s1 + $0x148] sm:$0xff] }
 0x3f0   :  { %v4514_v56 = vpop.eup %4513 }
 0x3f1   :  { %v378_v57 = vmul.f32 %v4514_v56, %v4512_v53  ;;  %v4933_v53 = vld [vmem:[%s5365_s1 + $0x158] sm:$0xff] }
 0x3f3   :  { %4145 = vmatmul.mubr.msk.f32.vlgmr.msra.gmra.mxu1 %vm367_vm3, %v378_v57  ;;  %v4959_v57 = vld [vmem:[%s5365_s1 + $0x140] sm:$0xff] }
 0x3f4   :  { %4159 = vmatpush3.msra.mxu1 %v4793_v58  ;;  %4166 = vmatprep.mubr.msk.f32.mxu1 %vm4568_vm1, %v5375_v7 }
 0x3f5   :  { %4160 = vmatprep.subr.mxu1 %v5375_v7 }
 0x3f6   :  { %4161 = vmatpush3.msra.mxu1 %v4799_v59 }
 0x3f7   :  { %4162 = vmatprep.subr.mxu1 %v5375_v7 }
 0x3f8   :  { %4163 = vmatpush3.msra.mxu1 %v4808_v60 }
 0x3f9   :  { %4164 = vmatprep.subr.mxu1 %v5375_v7 }
 0x3fa   :  { %4165 = vmatpush3.msra.mxu1 %v4815_v61 }
 0x3fb   :  { %4167 = vmatmul.mubr.msk.f32.vlgmr.msra.gmra.mxu1 %vm23_vm0, %v4676_v24  ;;  %4180 = vmatprep.subr.mxu1 %v5375_v7 }
 0x3fc   :  { %4182 = vmatprep.mubr.msk.f32.mxu1 %vm4568_vm1, %v5375_v7 }
 0x4b3   :  { %v448_v62 = vpop.f32.mrf.mxu1 }
 0x4b5   :  { %v4146_v63 = vpop.f32.mrf.mxu1 }
 0x4bb   :  { %v605_v0 = vpop.f32.mrf.mxu1 }
 0x4bc   :  { %4181 = vmatpush3.xpose.msk.msra.mxu1 %vm290_vm2, %v605_v0 }
 0x4bd   :  { %v4168_v1 = vpop.f32.mrf.mxu1  ;;  %4185 = vmatprep.subr.mxu1 %v5375_v7 }
 0x4bf   :  { %4183 = vmatmul.mubr.msk.f32.vlgmr.msra.gmra.mxu1 %vm290_vm2, %v535_v43  ;;  %v4882_v43 = vld [vmem:[%s5365_s1 + $0xc8] sm:$0xff] }
 0x4c0   :  { %4186 = vmatpush3.msra.mxu1 %v675_v45  ;;  %4187 = vmatprep.mubr.msk.f32.mxu1 %vm4568_vm1, %v5375_v7  ;;  %v4902_v45 = vld [vmem:[%s5365_s1 + $0x58] sm:$0xff] }
 0x4c1   :  { %4197 = vmatprep.subr.mxu1 %v5375_v7 }
 0x57f   :  { %v751_v2 = vpop.f32.mrf.mxu1 }
 0x580   :  { %v755_v3 = vsel %vm367_vm3, %v751_v2, -inf }
 0x581   :  { %756 = vmax.xlane.f32.xlu0 %v755_v3  ;;  %v4184_v4 = vpop.f32.mrf.mxu1 }
 0x60a   :  { %v757_v5 = vpop.xlane.xlu0 %756 }
 0x60b   :  { %v758_v6 = vsub.f32 %v751_v2, %v757_v5 }
 0x60d   :  { %v759_v16 = vmul.f32 1.442695, %v758_v6 }
 0x60f   :  { %4515 = vpow2.f32 %v759_v16 }
 0x61c   :  { %v4516_v17 = vpop.eup %4515 }
 0x61d   :  { %v761_v18 = vsel %vm367_vm3, %v4516_v17, 0.0 }
 0x61e   :  { %762 = vadd.xlane.f32.xlu1 %v761_v18 }
 0x6a7   :  { %v763_v23 = vpop.xlane.xlu1 %762 }
 0x6a8   :  { %4517 = vrcp.f32 %v763_v23 }
 0x6b5   :  { %v4518_v37 = vpop.eup %4517 }
 0x6b6   :  { %v765_v38 = vmul.f32 %v4518_v37, %v4516_v17 }
 0x6b8   :  { %4188 = vmatmul.mubr.msk.f32.vlgmr.msra.gmra.mxu1 %vm367_vm3, %v765_v38 }
 0x6b9   :  { %4198 = vmatpush3.msra.mxu1 %v4850_v39  ;;  %4201 = vmatprep.mubr.msk.f32.mxu1 %vm4568_vm1, %v5375_v7 }
 0x6ba   :  { %4199 = vmatprep.subr.mxu1 %v5375_v7 }
 0x6bb   :  { %4200 = vmatpush3.msra.mxu1 %v4856_v40 }
 0x6bc   :  { %4215 = vmatprep.subr.mxu1 %v5375_v7  ;;  %4202 = vmatmul.mubr.msk.f32.vlgmr.msra.gmra.mxu1 %vm290_vm2, %v448_v62 }
 0x6bd   :  { %4216 = vmatpush3.msra.mxu1 %v4865_v41  ;;  %4223 = vmatprep.mubr.msk.f32.mxu1 %vm4568_vm1, %v5375_v7 }
 0x6be   :  { %4217 = vmatprep.subr.mxu1 %v5375_v7 }
 0x6bf   :  { %4218 = vmatpush3.msra.mxu1 %v4873_v42 }
 0x6c0   :  { %4219 = vmatprep.subr.mxu1 %v5375_v7 }
 0x6c1   :  { %4220 = vmatpush3.msra.mxu1 %v4882_v43 }
 0x6c2   :  { %4221 = vmatprep.subr.mxu1 %v5375_v7 }
 0x6c3   :  { %4222 = vmatpush3.msra.mxu1 %v4889_v44 }
 0x6c4   :  { %4224 = vmatmul.mubr.msk.f32.vlgmr.msra.gmra.mxu1 %vm23_vm0, %v4676_v24  ;;  %4237 = vmatprep.subr.mxu1 %v5375_v7 }
 0x6c5   :  { %4239 = vmatprep.mubr.msk.f32.mxu1 %vm4568_vm1, %v5375_v7 }
 0x778   :  { %v835_v46 = vpop.f32.mrf.mxu1 }
 0x779   :  { %4195 = vmatmul.mubr.msk.f32.vlgmr.msra.gmra.mxu0 %vm290_vm2, %v835_v46  ;;  %v4981_v46 = vld [vmem:[%s5366_s2 + $0x28] sm:$0xff] }
 0x77a   :  { %4205 = vmatpush3.msra.mxu0 %v4902_v45  ;;  %v4189_v48 = vpop.f32.mrf.mxu1  ;;  %4212 = vmatprep.mubr.msk.f32.mxu0 %vm4568_vm1, %v5375_v7 }
 0x77b   :  { %4206 = vmatprep.subr.mxu0 %v5375_v7  ;;  %v4986_v48 = vld [vmem:[%s5366_s2 + $0x20] sm:$0xff] }
 0x77c   :  { %4207 = vmatpush3.msra.mxu0 %v4908_v47  ;;  %v4920_v50 = vpop.f32.mrf.mxu1 }
 0x77d   :  { %4208 = vmatprep.subr.mxu0 %v5375_v7 }
 0x77e   :  { %4209 = vmatpush3.msra.mxu0 %v4917_v49  ;;  %v4203_v52 = vpop.f32.mrf.mxu1 }
 0x77f   :  { %4210 = vmatprep.subr.mxu0 %v5375_v7 }
 0x780   :  { %4211 = vmatpush3.msra.mxu0 %v4926_v51 }
 0x781   :  { %4213 = vmatmul.mubr.msk.f32.vlgmr.msra.gmra.mxu0 %vm23_vm0, %v4676_v24  ;;  %4226 = vmatprep.subr.mxu0 %v5375_v7 }
 0x782   :  { %4227 = vmatpush3.msra.mxu0 %v4933_v53  ;;  %4234 = vmatprep.mubr.msk.f32.mxu0 %vm4568_vm1, %v5375_v7 }
 0x783   :  { %4228 = vmatprep.subr.mxu0 %v5375_v7 }
 0x784   :  { %v1139_v56 = vpop.f32.mrf.mxu1  ;;  %4229 = vmatpush3.msra.mxu0 %v4942_v54 }
 0x785   :  { %4230 = vmatprep.subr.mxu0 %v5375_v7  ;;  %4238 = vmatpush3.xpose.msk.msra.mxu1 %vm290_vm2, %v1139_v56 }
 0x786   :  { %v4225_v62 = vpop.f32.mrf.mxu1  ;;  %4231 = vmatpush3.msra.mxu0 %v4951_v55  ;;  %4242 = vmatprep.subr.mxu1 %v5375_v7 }
 0x787   :  { %4232 = vmatprep.subr.mxu0 %v5375_v7 }
 0x788   :  { %4233 = vmatpush3.msra.mxu0 %v4959_v57 }
 0x789   :  { %4235 = vmatmul.mubr.msk.f32.vlgmr.msra.gmra.mxu0 %vm23_vm0, %v4676_v24  ;;  %4247 = vmatprep.subr.mxu0 %v5375_v7 }
 0x78a   :  { %4251 = vmatprep.mubr.msk.f32.mxu0 %vm4568_vm1, %v5375_v7  ;;  %4248 = vmatpush3.msra.mxu0 %v4981_v46 }
 0x78b   :  { %4249 = vmatprep.subr.mxu0 %v5375_v7 }
 0x78c   :  { %4250 = vmatpush3.msra.mxu0 %v4986_v48 }
 0x78d   :  { %4265 = vmatprep.subr.mxu0 %v5375_v7 }
 0x839   :  { %v4970_v63 = vpop.f32.mrf.mxu0 }
 0x83b   :  { %v4196_v0 = vpop.f32.mrf.mxu0 }
 0x83c   :  { %v4995_v0 = vld [vmem:[%s5365_s1 + $0x78] sm:$0xff] }
 0x841   :  { %v1069_v1 = vpop.f32.mrf.mxu0 }
 0x842   :  { %4240 = vmatmul.mubr.msk.f32.vlgmr.msra.gmra.mxu1 %vm290_vm2, %v1069_v1  ;;  %v5001_v1 = vld [vmem:[%s5365_s1 + $0x70] sm:$0xff] }
 0x843   :  { %v4214_v2 = vpop.f32.mrf.mxu0  ;;  %4244 = vmatprep.mubr.msk.f32.mxu1 %vm4568_vm1, %v5375_v7 }
 0x844   :  { %v5010_v2 = vld [vmem:[%s5365_s1 + $0x68] sm:$0xff] }
 0x849   :  { %v1209_v3 = vpop.f32.mrf.mxu0 }
 0x84a   :  { %4243 = vmatpush3.msra.mxu1 %v1209_v3  ;;  %v5017_v3 = vld [vmem:[%s5365_s1 + $0x60] sm:$0xff] }
 0x84b   :  { %v4236_v4 = vpop.f32.mrf.mxu0  ;;  %4254 = vmatprep.subr.mxu1 %v5375_v7 }
 0x84c   :  { %v5024_v4 = vld [vmem:[%s5365_s1 + $0x178] sm:$0xff] }
 0x84d   :  { %5379 = vst [vmem:[#allocation5_spill] sm:$0xff] %v5024_v4 }
 0x902   :  { %v1285_v5 = vpop.f32.mrf.mxu1 }
 0x903   :  { %v1289_v6 = vsel %vm367_vm3, %v1285_v5, -inf }
 0x904   :  { %1290 = vmax.xlane.f32.xlu0 %v1289_v6  ;;  %v4241_v16 = vpop.f32.mrf.mxu1  ;;  %v5042_v6 = vld [vmem:[%s5365_s1 + $0x168] sm:$0xff] }
 0x905   :  { %5381 = vst [vmem:[#allocation7_spill] sm:$0xff] %v5042_v6  ;;  %v5049_v16 = vld [vmem:[%s5365_s1 + $0x160] sm:$0xff] }
 0x906   :  { %5382 = vst [vmem:[#allocation8_spill] sm:$0xff] %v5049_v16 }
 0x98d   :  { %v1291_v17 = vpop.xlane.xlu0 %1290 }
 0x98e   :  { %v1292_v18 = vsub.f32 %v1285_v5, %v1291_v17  ;;  %v5033_v5 = vld [vmem:[%s5365_s1 + $0x170] sm:$0xff]  ;;  %v5062_v17 = vld [vmem:[%s5365_s1 + $0xf8] sm:$0xff] }
 0x98f   :  { %5380 = vst [vmem:[#allocation6_spill] sm:$0xff] %v5033_v5  ;;  %5383 = vst [vmem:[#allocation9_spill] sm:$0xff] %v5062_v17 }
 0x990   :  { %v1293_v23 = vmul.f32 1.442695, %v1292_v18 }
 0x992   :  { %4519 = vpow2.f32 %v1293_v23  ;;  %v5068_v23 = vld [vmem:[%s5365_s1 + $0xf0] sm:$0xff] }
 0x993   :  { %5384 = vst [vmem:[#allocation10_spill] sm:$0xff] %v5068_v23 }
 0x99f   :  { %v4520_v37 = vpop.eup %4519 }
 0x9a0   :  { %v1295_v38 = vsel %vm367_vm3, %v4520_v37, 0.0 }
 0x9a1   :  { %1296 = vadd.xlane.f32.xlu1 %v1295_v38  ;;  %v5077_v38 = vld [vmem:[%s5365_s1 + $0xe8] sm:$0xff] }
 0x9a2   :  { %5385 = vst [vmem:[#allocation11_spill] sm:$0xff] %v5077_v38 }
 0xa2a   :  { %v1297_v52 = vpop.xlane.xlu1 %1296 }
 0xa2b   :  { %4521 = vrcp.f32 %v1297_v52  ;;  %v5084_v52 = vld [vmem:[%s5365_s1 + $0xe0] sm:$0xff] }
 0xa2c   :  { %5386 = vst [vmem:[#allocation12_spill] sm:$0xff] %v5084_v52 }
 0xa38   :  { %v4522_v56 = vpop.eup %4521 }
 0xa39   :  { %v1299_v62 = vmul.f32 %v4522_v56, %v4520_v37 }
 0xa3b   :  { %4245 = vmatmul.mubr.msk.f32.vlgmr.msra.gmra.mxu1 %vm367_vm3, %v1299_v62 }
 0xa3c   :  { %4255 = vmatpush3.msra.mxu1 %v4995_v0  ;;  %4262 = vmatprep.mubr.msk.f32.mxu1 %vm4568_vm1, %v5375_v7 }
 0xa3d   :  { %4256 = vmatprep.subr.mxu1 %v5375_v7 }
 0xa3e   :  { %4257 = vmatpush3.msra.mxu1 %v5001_v1 }
 0xa3f   :  { %4258 = vmatprep.subr.mxu1 %v5375_v7 }
 0xa40   :  { %4259 = vmatpush3.msra.mxu1 %v5010_v2 }
 0xa41   :  { %4260 = vmatprep.subr.mxu1 %v5375_v7 }
 0xa42   :  { %4261 = vmatpush3.msra.mxu1 %v5017_v3 }
 0xa43   :  { %4263 = vmatmul.mubr.msk.f32.vlgmr.msra.gmra.mxu1 %vm23_vm0, %v4676_v24  ;;  %4276 = vmatprep.subr.mxu1 %v5375_v7 }
 0xa44   :  { %4277 = vmatpush3.msra.mxu1 %v5024_v4  ;;  %4284 = vmatprep.mubr.msk.f32.mxu1 %vm4568_vm1, %v5375_v7 }
 0xa45   :  { %4278 = vmatprep.subr.mxu1 %v5375_v7 }
 0xa46   :  { %4279 = vmatpush3.msra.mxu1 %v5033_v5 }
 0xa47   :  { %4280 = vmatprep.subr.mxu1 %v5375_v7 }
 0xa48   :  { %4281 = vmatpush3.msra.mxu1 %v5042_v6 }
 0xa49   :  { %4282 = vmatprep.subr.mxu1 %v5375_v7 }
 0xa4a   :  { %4283 = vmatpush3.msra.mxu1 %v5049_v16 }
 0xa4b   :  { %4285 = vmatmul.mubr.msk.f32.vlgmr.msra.gmra.mxu1 %vm23_vm0, %v4676_v24  ;;  %4297 = vmatprep.subr.mxu1 %v5375_v7 }
 0xa4c   :  { %4301 = vmatprep.mubr.msk.f32.mxu1 %vm4568_vm1, %v5375_v7 }
 0xafb   :  { %v1369_v18 = vpop.f32.mrf.mxu1 }
 0xafc   :  { %4252 = vmatmul.mubr.msk.f32.vlgmr.msra.gmra.mxu0 %vm290_vm2, %v1369_v18 }
 0xafd   :  { %4266 = vmatpush3.msra.mxu0 %v5062_v17  ;;  %v4246_v37 = vpop.f32.mrf.mxu1  ;;  %4273 = vmatprep.mubr.msk.f32.mxu0 %vm4568_vm1, %v5375_v7 }
 0xafe   :  { %4267 = vmatprep.subr.mxu0 %v5375_v7 }
 0xaff   :  { %4268 = vmatpush3.msra.mxu0 %v5068_v23  ;;  %v985_v23 = vadd.f32 %v4920_v50, %v4970_v63  ;;  %v19_v50 = vld [vmem:[%s5364_s0 + $0x8] sm:$0xff] }
 0xb00   :  { %4269 = vmatprep.subr.mxu0 %v5375_v7 }
 0xb01   :  { %4270 = vmatpush3.msra.mxu0 %v5077_v38 }
 0xb02   :  { %4271 = vmatprep.subr.mxu0 %v5375_v7 }
 0xb03   :  { %v1531_v56 = vpop.f32.mrf.mxu1  ;;  %4272 = vmatpush3.msra.mxu0 %v5084_v52 }
 0xb04   :  { %4274 = vmatmul.mubr.msk.f32.vlgmr.msra.gmra.mxu0 %vm23_vm0, %v4676_v24  ;;  %4287 = vmatprep.subr.mxu0 %v5375_v7 }
 0xb05   :  { %v4264_v62 = vpop.f32.mrf.mxu1  ;;  %4289 = vmatprep.mubr.msk.f32.mxu0 %vm4568_vm1, %v5375_v7 }
 0xb0b   :  { %v1671_v18 = vpop.f32.mrf.mxu1 }
 0xb0d   :  { %v4286_v37 = vpop.f32.mrf.mxu1 }
 0xbbc   :  { %v1445_v38 = vpop.f32.mrf.mxu0 }
 0xbbd   :  { %v5096_v17 = vadd.f32 %v1445_v38, %v985_v23 }
 0xbbe   :  { %v4253_v16 = vpop.f32.mrf.mxu0 }
 0xbbf   :  { %v27_v16 = vsel %vm23_vm0, %v19_v50, 0.0 }
 0xbc4   :  { %v1601_v6 = vpop.f32.mrf.mxu0 }
 0xbc5   :  { %4288 = vmatpush3.xpose.msk.msra.mxu0 %vm290_vm2, %v1601_v6 }
 0xbc6   :  { %v4275_v52 = vpop.f32.mrf.mxu0  ;;  %4292 = vmatprep.subr.mxu0 %v5375_v7 }
 0xbc8   :  { %4290 = vmatmul.mubr.msk.f32.vlgmr.msra.gmra.mxu0 %vm290_vm2, %v1531_v56 }
 0xbc9   :  { %4293 = vmatpush3.msra.mxu0 %v1671_v18  ;;  %4294 = vmatprep.mubr.msk.f32.mxu0 %vm4568_vm1, %v5375_v7 }
 0xbca   :  { %4304 = vmatprep.subr.mxu0 %v5375_v7 }
 0xc88   :  { %v1747_v24 = vpop.f32.mrf.mxu0 }
 0xc89   :  { %v1751_v63 = vsel %vm367_vm3, %v1747_v24, -inf }
 0xc8a   :  { %1752 = vmax.xlane.f32.xlu0 %v1751_v63  ;;  %v4291_v6 = vpop.f32.mrf.mxu0  ;;  %v5114_v63 = vld [vmem:[%s5366_s2 + $0x38] sm:$0xff] }
 0xc8b   :  { %4298 = vmatpush3.msra.mxu1 %v5114_v63 }
 0xc8e   :  { %28 = vadd.xlane.f32.xlu0 %v27_v16 }
 0xd13   :  { %v1753_v23 = vpop.xlane.xlu0 %1752 }
 0xd14   :  { %v1754_v38 = vsub.f32 %v1747_v24, %v1753_v23  ;;  %v5119_v24 = vld [vmem:[%s5366_s2 + $0x30] sm:$0xff] }
 0xd16   :  { %v1755_v52 = vmul.f32 1.442695, %v1754_v38 }
 0xd17   :  { %v29_v56 = vpop.xlane.xlu0 %28 }
 0xd18   :  { %4523 = vpow2.f32 %v1755_v52  ;;  %v32_v62 = vmul.f32 0.03125, %v29_v56 }
 0xd1a   :  { %v34_v18 = vsub.f32 %v19_v50, %v32_v62  ;;  %v5387_v50 = vmov 0.0  }
 0xd1b   :  { %4299 = vmatprep.subr.mxu1 %v5387_v50 }
 0xd1c   :  { %v36_v37 = vmul.f32 %v34_v18, %v34_v18  ;;  %4300 = vmatpush3.msra.mxu1 %v5119_v24 }
 0xd1d   :  { %4315 = vmatprep.subr.mxu1 %v5387_v50 }
 0xd1e   :  { %v40_v4 = vsel %vm23_vm0, %v36_v37, 0.0 }
 0xd25   :  { %v4524_v7 = vpop.eup %4523 }
 0xd26   :  { %v1757_v5 = vsel %vm367_vm3, %v4524_v7, 0.0 }
 0xd27   :  { %1758 = vadd.xlane.f32.xlu1 %v1757_v5 }
 0xd2b   :  { %41 = vadd.xlane.f32.xlu1 %v40_v4 }
 0xdb0   :  { %v1759_v5 = vpop.xlane.xlu1 %1758 }
 0xdb1   :  { %4525 = vrcp.f32 %v1759_v5 }
 0xdb4   :  { %v42_v4 = vpop.xlane.xlu1 %41 }
 0xdb5   :  { %v44_v6 = vmul.f32 0.03125, %v42_v4 }
 0xdb7   :  { %v46_v16 = vadd.f32 1e-05, %v44_v6 }
 0xdb9   :  { %4527 = vrsqrt.f32 %v46_v16 }
 0xdbe   :  { %v4526_v23 = vpop.eup %4525 }
 0xdbf   :  { %v1761_v38 = vmul.f32 %v4526_v23, %v4524_v7 }
 0xdc1   :  { %4295 = vmatmul.mubr.msk.f32.vlgmr.msra.gmra.mxu0 %vm367_vm3, %v1761_v38 }
 0xdc2   :  { %4305 = vmatpush3.msra.mxu0 %v4606_v8  ;;  %4312 = vmatprep.mubr.msk.f32.mxu0 %vm4568_vm1, %v5387_v50 }
 0xdc3   :  { %4306 = vmatprep.subr.mxu0 %v5387_v50 }
 0xdc4   :  { %4307 = vmatpush3.msra.mxu0 %v4620_v10 }
 0xdc5   :  { %4308 = vmatprep.subr.mxu0 %v5387_v50 }
 0xdc6   :  { %v4528_v52 = vpop.eup %4527  ;;  %4309 = vmatpush3.msra.mxu0 %v4634_v12 }
 0xdc7   :  { %v50_v56 = vmul.f32 %v4528_v52, %v34_v18  ;;  %4310 = vmatprep.subr.mxu0 %v5387_v50 }
 0xdc8   :  { %4311 = vmatpush3.msra.mxu0 %v4648_v14 }
 0xdc9   :  { %v56_v7 = vmul.f32 %v4667_v20, %v50_v56  ;;  %4326 = vmatprep.subr.mxu0 %v5387_v50 }
 0xdcb   :  { %v5138_v8 = vadd.f32 %v4672_v22, %v56_v7 }
 0xdcd   :  { %4313 = vmatmul.mubr.msk.f32.vlgmr.msra.gmra.mxu0 %vm23_vm0, %v5138_v8 }
 0xdce   :  { %4327 = vmatpush3.msra.mxu0 %v4681_v25  ;;  %4334 = vmatprep.mubr.msk.f32.mxu0 %vm4568_vm1, %v5387_v50 }
 0xdcf   :  { %4328 = vmatprep.subr.mxu0 %v5387_v50 }
 0xdd0   :  { %4329 = vmatpush3.msra.mxu0 %v4690_v26 }
 0xdd1   :  { %4330 = vmatprep.subr.mxu0 %v5387_v50 }
 0xdd2   :  { %4331 = vmatpush3.msra.mxu0 %v4699_v27 }
 0xdd3   :  { %4332 = vmatprep.subr.mxu0 %v5387_v50 }
 0xdd4   :  { %4333 = vmatpush3.msra.mxu0 %v4708_v28 }
 0xdd5   :  { %4347 = vmatprep.subr.mxu0 %v5387_v50  ;;  %4335 = vmatmul.mubr.msk.f32.vlgmr.msra.gmra.mxu0 %vm23_vm0, %v5138_v8 }
 0xdd6   :  { %4348 = vmatpush3.msra.mxu0 %v4715_v29  ;;  %4355 = vmatprep.mubr.msk.f32.mxu0 %vm4568_vm1, %v5387_v50 }
 0xdd7   :  { %4349 = vmatprep.subr.mxu0 %v5387_v50 }
 0xdd8   :  { %4350 = vmatpush3.msra.mxu0 %v4724_v30 }
 0xdd9   :  { %4351 = vmatprep.subr.mxu0 %v5387_v50 }
 0xdda   :  { %4352 = vmatpush3.msra.mxu0 %v4733_v31 }
 0xddb   :  { %4353 = vmatprep.subr.mxu0 %v5387_v50 }
 0xddc   :  { %4354 = vmatpush3.msra.mxu0 %v4740_v32 }
 0xddd   :  { %4369 = vmatprep.subr.mxu0 %v5387_v50  ;;  %4356 = vmatmul.mubr.msk.f32.vlgmr.msra.gmra.mxu0 %vm23_vm0, %v5138_v8 }
 0xdde   :  { %4370 = vmatpush3.msra.mxu0 %v4747_v33  ;;  %4377 = vmatprep.mubr.msk.f32.mxu0 %vm4568_vm1, %v5387_v50 }
 0xddf   :  { %4371 = vmatprep.subr.mxu0 %v5387_v50 }
 0xde0   :  { %4372 = vmatpush3.msra.mxu0 %v4756_v34 }
 0xde1   :  { %4373 = vmatprep.subr.mxu0 %v5387_v50 }
 0xde2   :  { %4374 = vmatpush3.msra.mxu0 %v4765_v35 }
 0xde3   :  { %4375 = vmatprep.subr.mxu0 %v5387_v50 }
 0xde4   :  { %4376 = vmatpush3.msra.mxu0 %v4772_v36 }
 0xde5   :  { %4378 = vmatmul.mubr.msk.f32.vlgmr.msra.gmra.mxu0 %vm23_vm0, %v5138_v8  ;;  %4390 = vmatprep.subr.mxu0 %v5387_v50 }
 0xde6   :  { %4391 = vmatpush3.msra.mxu0 %v4836_v19  ;;  %4394 = vmatprep.mubr.msk.f32.mxu0 %vm4568_vm1, %v5387_v50 }
 0xde7   :  { %4392 = vmatprep.subr.mxu0 %v5387_v50 }
 0xde8   :  { %4393 = vmatpush3.msra.mxu0 %v4841_v21 }
 0xde9   :  { %4404 = vmatprep.subr.mxu0 %v5387_v50 }
 0xe81   :  { %v1831_v10 = vpop.f32.mrf.mxu0 }
 0xe82   :  { %4302 = vmatmul.mubr.msk.f32.vlgmr.msra.gmra.mxu1 %vm290_vm2, %v1831_v10 }
 0xe83   :  { %4316 = vmatpush3.msra.mxu1 %v4613_v9  ;;  %v4296_v12 = vpop.f32.mrf.mxu0  ;;  %4323 = vmatprep.mubr.msk.f32.mxu1 %vm4568_vm1, %v5387_v50 }
 0xe84   :  { %4317 = vmatprep.subr.mxu1 %v5387_v50 }
 0xe85   :  { %4318 = vmatpush3.msra.mxu1 %v4627_v11 }
 0xe86   :  { %4319 = vmatprep.subr.mxu1 %v5387_v50 }
 0xe87   :  { %4320 = vmatpush3.msra.mxu1 %v4641_v13 }
 0xe88   :  { %4321 = vmatprep.subr.mxu1 %v5387_v50 }
 0xe89   :  { %4322 = vmatpush3.msra.mxu1 %v4655_v15  ;;  %v5202_v15 = vld [vmem:[%s5367_s3 + $0x2] ss:$0 sm:$0xff]  ;;  %s4569_s3 = smov [#allocation2]  }
 0xe8a   :  { %4324 = vmatmul.mubr.msk.f32.vlgmr.msra.gmra.mxu1 %vm23_vm0, %v5138_v8  ;;  %4337 = vmatprep.subr.mxu1 %v5387_v50  ;;  %s3758_s30 = sshll.u32 %s4569_s3, 4  ;;  %s3759_s30 = int_to_ptr.vmem [resolvable:$true] %s3758_s30 }
 0xe8b   :  { %4339 = vmatprep.mubr.msk.f32.mxu1 %vm4568_vm1, %v5387_v50  ;;  %s4545_s5 = scalar_lea.vmem %s3759_s30, 256  ;;  %p4550_p1 = scmp.lt.s32.totalorder %s3759_s30, %s3759_s30 }
 0xe8c   :  { %p4546_p0 = scmp.ne.s32.totalorder %s3759_s30, %s4545_s5  ;;  %p4551_p2 = scmp.lt.s32.totalorder %s4545_s5, %s4545_s5 }
 0xe8d   :  { %v1999_v9 = vpop.f32.mrf.mxu0 }
 0xe8e   :  { %p4552_p3 = por %p4551_p2, %p4550_p1 }
 0xe8f   :  { %v4314_v14 = vpop.f32.mrf.mxu0 }
 0xe90   :  { %p4553_p4 = pnand %p4552_p3, %p4546_p0 }
 0xe95   :  { %v2139_v20 = vpop.f32.mrf.mxu0 }
 0xe97   :  { %v4336_v11 = vpop.f32.mrf.mxu0 }
 0xe9d   :  { %v2383_v22 = vpop.f32.mrf.mxu0 }
 0xe9f   :  { %v4357_v25 = vpop.f32.mrf.mxu0 }
 0xea5   :  { %v2523_v26 = vpop.f32.mrf.mxu0 }
 0xea7   :  { %v4379_v13 = vpop.f32.mrf.mxu0 }
 0xf42   :  { %v1907_v27 = vpop.f32.mrf.mxu1 }
 0xf43   :  { %v1911_v28 = vadd.f32 %v1907_v27, %v5096_v17 }
 0xf44   :  { %v4303_v29 = vpop.f32.mrf.mxu1 }
 0xf45   :  { %v1916_v30 = vadd.f32 %v5202_v15, %v1911_v28  ;;  %v5392_v28 = vld [vmem:[#allocation9_spill] sm:$0xff] }
 0xf47   :  { %1917 = vst.msk [vmem:[#allocation2] sm:$0xff] %vm23_vm0, %v1916_v30  ;;  %v5393_v30 = vld [vmem:[#allocation10_spill] sm:$0xff] }
 0xf4a   :  { %v2069_v31 = vpop.f32.mrf.mxu1 }
 0xf4b   :  { %4338 = vmatpush3.xpose.msk.msra.mxu1 %vm290_vm2, %v2069_v31  ;;  %v5395_v31 = vld [vmem:[#allocation12_spill] sm:$0xff] }
 0xf4c   :  { %v4325_v32 = vpop.f32.mrf.mxu1  ;;  %4342 = vmatprep.subr.mxu1 %v5387_v50 }
 0xf4e   :  { %4340 = vmatmul.mubr.msk.f32.vlgmr.msra.gmra.mxu1 %vm290_vm2, %v1999_v9 }
 0xf4f   :  { %4343 = vmatpush3.msra.mxu1 %v2139_v20  ;;  %4344 = vmatprep.mubr.msk.f32.mxu1 %vm4568_vm1, %v5387_v50 }
 0xf50   :  { %4358 = vmatprep.subr.mxu1 %v5387_v50 }
0x100e   :  { %v2215_v33 = vpop.f32.mrf.mxu1 }
0x100f   :  { %v2219_v34 = vsel %vm367_vm3, %v2215_v33, -inf }
0x1010   :  { %2220 = vmax.xlane.f32.xlu0 %v2219_v34  ;;  %v4341_v35 = vpop.f32.mrf.mxu1 }
0x1099   :  { %v2221_v36 = vpop.xlane.xlu0 %2220 }
0x109a   :  { %v2222_v19 = vsub.f32 %v2215_v33, %v2221_v36 }
0x109c   :  { %v2223_v21 = vmul.f32 1.442695, %v2222_v19 }
0x109e   :  { %4529 = vpow2.f32 %v2223_v21 }
0x10ab   :  { %v4530_v17 = vpop.eup %4529 }
0x10ac   :  { %v2225_v62 = vsel %vm367_vm3, %v4530_v17, 0.0 }
0x10ad   :  { %2226 = vadd.xlane.f32.xlu1 %v2225_v62 }
0x1136   :  { %v2227_v18 = vpop.xlane.xlu1 %2226 }
0x1137   :  { %4531 = vrcp.f32 %v2227_v18 }
0x1144   :  { %v4532_v37 = vpop.eup %4531 }
0x1145   :  { %v2229_v5 = vmul.f32 %v4532_v37, %v4530_v17 }
0x1147   :  { %4345 = vmatmul.mubr.msk.f32.vlgmr.msra.gmra.mxu1 %vm367_vm3, %v2229_v5 }
0x1148   :  { %4359 = vmatpush3.msra.mxu1 %v4793_v58  ;;  %4366 = vmatprep.mubr.msk.f32.mxu1 %vm4568_vm1, %v5387_v50 }
0x1149   :  { %4360 = vmatprep.subr.mxu1 %v5387_v50 }
0x114a   :  { %4361 = vmatpush3.msra.mxu1 %v4799_v59 }
0x114b   :  { %4362 = vmatprep.subr.mxu1 %v5387_v50 }
0x114c   :  { %4363 = vmatpush3.msra.mxu1 %v4808_v60 }
0x114d   :  { %4364 = vmatprep.subr.mxu1 %v5387_v50 }
0x114e   :  { %4365 = vmatpush3.msra.mxu1 %v4815_v61 }
0x114f   :  { %4367 = vmatmul.mubr.msk.f32.vlgmr.msra.gmra.mxu1 %vm23_vm0, %v5138_v8  ;;  %4380 = vmatprep.subr.mxu1 %v5387_v50 }
0x1150   :  { %4382 = vmatprep.mubr.msk.f32.mxu1 %vm4568_vm1, %v5387_v50 }
0x1207   :  { %v2299_v58 = vpop.f32.mrf.mxu1 }
0x1209   :  { %v4346_v4 = vpop.f32.mrf.mxu1 }
0x120f   :  { %v2453_v6 = vpop.f32.mrf.mxu1 }
0x1210   :  { %4381 = vmatpush3.xpose.msk.msra.mxu1 %vm290_vm2, %v2453_v6 }
0x1211   :  { %v4368_v59 = vpop.f32.mrf.mxu1  ;;  %4385 = vmatprep.subr.mxu1 %v5387_v50 }
0x1213   :  { %4383 = vmatmul.mubr.msk.f32.vlgmr.msra.gmra.mxu1 %vm290_vm2, %v2383_v22 }
0x1214   :  { %4386 = vmatpush3.msra.mxu1 %v2523_v26  ;;  %4387 = vmatprep.mubr.msk.f32.mxu1 %vm4568_vm1, %v5387_v50 }
0x1215   :  { %4397 = vmatprep.subr.mxu1 %v5387_v50 }
0x12d3   :  { %v2599_v60 = vpop.f32.mrf.mxu1 }
0x12d4   :  { %v2603_v61 = vsel %vm367_vm3, %v2599_v60, -inf }
0x12d5   :  { %2604 = vmax.xlane.f32.xlu0 %v2603_v61  ;;  %v4384_v16 = vpop.f32.mrf.mxu1 }
0x135e   :  { %v2605_v23 = vpop.xlane.xlu0 %2604 }
0x135f   :  { %v2606_v38 = vsub.f32 %v2599_v60, %v2605_v23 }
0x1361   :  { %v2607_v52 = vmul.f32 1.442695, %v2606_v38 }
0x1363   :  { %4533 = vpow2.f32 %v2607_v52 }
0x1370   :  { %v4534_v56 = vpop.eup %4533 }
0x1371   :  { %v2609_v7 = vsel %vm367_vm3, %v4534_v56, 0.0 }
0x1372   :  { %2610 = vadd.xlane.f32.xlu1 %v2609_v7 }
0x13fb   :  { %v2611_v10 = vpop.xlane.xlu1 %2610 }
0x13fc   :  { %4535 = vrcp.f32 %v2611_v10 }
0x1409   :  { %v4536_v12 = vpop.eup %4535 }
0x140a   :  { %v2613_v9 = vmul.f32 %v4536_v12, %v4534_v56 }
0x140c   :  { %4388 = vmatmul.mubr.msk.f32.vlgmr.msra.gmra.mxu1 %vm367_vm3, %v2613_v9 }
0x140d   :  { %4398 = vmatpush3.msra.mxu1 %v4850_v39  ;;  %4401 = vmatprep.mubr.msk.f32.mxu1 %vm4568_vm1, %v5387_v50 }
0x140e   :  { %4399 = vmatprep.subr.mxu1 %v5387_v50 }
0x140f   :  { %4400 = vmatpush3.msra.mxu1 %v4856_v40 }
0x1410   :  { %4415 = vmatprep.subr.mxu1 %v5387_v50  ;;  %4402 = vmatmul.mubr.msk.f32.vlgmr.msra.gmra.mxu1 %vm290_vm2, %v2299_v58 }
0x1411   :  { %4416 = vmatpush3.msra.mxu1 %v4865_v41  ;;  %4423 = vmatprep.mubr.msk.f32.mxu1 %vm4568_vm1, %v5387_v50 }
0x1412   :  { %4417 = vmatprep.subr.mxu1 %v5387_v50 }
0x1413   :  { %4418 = vmatpush3.msra.mxu1 %v4873_v42 }
0x1414   :  { %4419 = vmatprep.subr.mxu1 %v5387_v50 }
0x1415   :  { %4420 = vmatpush3.msra.mxu1 %v4882_v43 }
0x1416   :  { %4421 = vmatprep.subr.mxu1 %v5387_v50 }
0x1417   :  { %4422 = vmatpush3.msra.mxu1 %v4889_v44 }
0x1418   :  { %4424 = vmatmul.mubr.msk.f32.vlgmr.msra.gmra.mxu1 %vm23_vm0, %v5138_v8  ;;  %4437 = vmatprep.subr.mxu1 %v5387_v50 }
0x1419   :  { %4439 = vmatprep.mubr.msk.f32.mxu1 %vm4568_vm1, %v5387_v50 }
0x14cc   :  { %v2683_v39 = vpop.f32.mrf.mxu1 }
0x14cd   :  { %4395 = vmatmul.mubr.msk.f32.vlgmr.msra.gmra.mxu0 %vm290_vm2, %v2683_v39 }
0x14ce   :  { %4405 = vmatpush3.msra.mxu0 %v4902_v45  ;;  %v4389_v40 = vpop.f32.mrf.mxu1  ;;  %4412 = vmatprep.mubr.msk.f32.mxu0 %vm4568_vm1, %v5387_v50 }
0x14cf   :  { %4406 = vmatprep.subr.mxu0 %v5387_v50 }
0x14d0   :  { %4407 = vmatpush3.msra.mxu0 %v4908_v47  ;;  %v5266_v41 = vpop.f32.mrf.mxu1 }
0x14d1   :  { %4408 = vmatprep.subr.mxu0 %v5387_v50 }
0x14d2   :  { %4409 = vmatpush3.msra.mxu0 %v4917_v49  ;;  %v4403_v42 = vpop.f32.mrf.mxu1 }
0x14d3   :  { %4410 = vmatprep.subr.mxu0 %v5387_v50 }
0x14d4   :  { %4411 = vmatpush3.msra.mxu0 %v4926_v51 }
0x14d5   :  { %4413 = vmatmul.mubr.msk.f32.vlgmr.msra.gmra.mxu0 %vm23_vm0, %v5138_v8  ;;  %4426 = vmatprep.subr.mxu0 %v5387_v50 }
0x14d6   :  { %4427 = vmatpush3.msra.mxu0 %v4933_v53  ;;  %4434 = vmatprep.mubr.msk.f32.mxu0 %vm4568_vm1, %v5387_v50 }
0x14d7   :  { %4428 = vmatprep.subr.mxu0 %v5387_v50 }
0x14d8   :  { %v2983_v43 = vpop.f32.mrf.mxu1  ;;  %4429 = vmatpush3.msra.mxu0 %v4942_v54 }
0x14d9   :  { %4430 = vmatprep.subr.mxu0 %v5387_v50  ;;  %4438 = vmatpush3.xpose.msk.msra.mxu1 %vm290_vm2, %v2983_v43 }
0x14da   :  { %v4425_v44 = vpop.f32.mrf.mxu1  ;;  %4431 = vmatpush3.msra.mxu0 %v4951_v55  ;;  %4442 = vmatprep.subr.mxu1 %v5387_v50 }
0x14db   :  { %4432 = vmatprep.subr.mxu0 %v5387_v50 }
0x14dc   :  { %4433 = vmatpush3.msra.mxu0 %v4959_v57 }
0x14dd   :  { %4435 = vmatmul.mubr.msk.f32.vlgmr.msra.gmra.mxu0 %vm23_vm0, %v5138_v8  ;;  %4447 = vmatprep.subr.mxu0 %v5387_v50 }
0x14de   :  { %4448 = vmatpush3.msra.mxu0 %v4981_v46  ;;  %4451 = vmatprep.mubr.msk.f32.mxu0 %vm4568_vm1, %v5387_v50 }
0x14df   :  { %4449 = vmatprep.subr.mxu0 %v5387_v50 }
0x14e0   :  { %4450 = vmatpush3.msra.mxu0 %v4986_v48 }
0x14e1   :  { %4465 = vmatprep.subr.mxu0 %v5387_v50 }
0x158d   :  { %v5295_v45 = vpop.f32.mrf.mxu0 }
0x158e   :  { %v2832_v35 = vadd.f32 %v5266_v41, %v5295_v45 }
0x158f   :  { %v4396_v47 = vpop.f32.mrf.mxu0 }
0x1595   :  { %v2913_v49 = vpop.f32.mrf.mxu0 }
0x1596   :  { %4440 = vmatmul.mubr.msk.f32.vlgmr.msra.gmra.mxu1 %vm290_vm2, %v2913_v49 }
0x1597   :  { %v4414_v51 = vpop.f32.mrf.mxu0  ;;  %4444 = vmatprep.mubr.msk.f32.mxu1 %vm4568_vm1, %v5387_v50 }
0x159d   :  { %v3053_v53 = vpop.f32.mrf.mxu0 }
0x159e   :  { %4443 = vmatpush3.msra.mxu1 %v3053_v53 }
0x159f   :  { %v4436_v54 = vpop.f32.mrf.mxu0  ;;  %4454 = vmatprep.subr.mxu1 %v5387_v50 }
0x1656   :  { %v3129_v55 = vpop.f32.mrf.mxu1 }
0x1657   :  { %v3133_v57 = vsel %vm367_vm3, %v3129_v55, -inf }
0x1658   :  { %3134 = vmax.xlane.f32.xlu0 %v3133_v57  ;;  %v4441_v46 = vpop.f32.mrf.mxu1 }
0x16e1   :  { %v3135_v48 = vpop.xlane.xlu0 %3134 }
0x16e2   :  { %v3136_v14 = vsub.f32 %v3129_v55, %v3135_v48 }
0x16e4   :  { %v3137_v20 = vmul.f32 1.442695, %v3136_v14 }
0x16e6   :  { %4537 = vpow2.f32 %v3137_v20 }
0x16f3   :  { %v4538_v11 = vpop.eup %4537 }
0x16f4   :  { %v3139_v22 = vsel %vm367_vm3, %v4538_v11, 0.0 }
0x16f5   :  { %3140 = vadd.xlane.f32.xlu1 %v3139_v22 }
0x177e   :  { %v3141_v25 = vpop.xlane.xlu1 %3140 }
0x177f   :  { %4539 = vrcp.f32 %v3141_v25 }
0x178c   :  { %v4540_v26 = vpop.eup %4539 }
0x178d   :  { %v3143_v13 = vmul.f32 %v4540_v26, %v4538_v11 }
0x178f   :  { %4445 = vmatmul.mubr.msk.f32.vlgmr.msra.gmra.mxu1 %vm367_vm3, %v3143_v13 }
0x1790   :  { %4455 = vmatpush3.msra.mxu1 %v4995_v0  ;;  %4462 = vmatprep.mubr.msk.f32.mxu1 %vm4568_vm1, %v5387_v50  ;;  %v5388_v0 = vld [vmem:[#allocation5_spill] sm:$0xff] }
0x1791   :  { %4456 = vmatprep.subr.mxu1 %v5387_v50 }
0x1792   :  { %4457 = vmatpush3.msra.mxu1 %v5001_v1  ;;  %v5389_v1 = vld [vmem:[#allocation6_spill] sm:$0xff] }
0x1793   :  { %4458 = vmatprep.subr.mxu1 %v5387_v50 }
0x1794   :  { %4459 = vmatpush3.msra.mxu1 %v5010_v2  ;;  %v5390_v2 = vld [vmem:[#allocation7_spill] sm:$0xff] }
0x1795   :  { %4460 = vmatprep.subr.mxu1 %v5387_v50 }
0x1796   :  { %4461 = vmatpush3.msra.mxu1 %v5017_v3  ;;  %v5391_v3 = vld [vmem:[#allocation8_spill] sm:$0xff] }
0x1797   :  { %4463 = vmatmul.mubr.msk.f32.vlgmr.msra.gmra.mxu1 %vm23_vm0, %v5138_v8  ;;  %4476 = vmatprep.subr.mxu1 %v5387_v50 }
0x1798   :  { %4477 = vmatpush3.msra.mxu1 %v5388_v0  ;;  %4484 = vmatprep.mubr.msk.f32.mxu1 %vm4568_vm1, %v5387_v50 }
0x1799   :  { %4478 = vmatprep.subr.mxu1 %v5387_v50 }
0x179a   :  { %4479 = vmatpush3.msra.mxu1 %v5389_v1 }
0x179b   :  { %4480 = vmatprep.subr.mxu1 %v5387_v50 }
0x179c   :  { %4481 = vmatpush3.msra.mxu1 %v5390_v2 }
0x179d   :  { %4482 = vmatprep.subr.mxu1 %v5387_v50 }
0x179e   :  { %4483 = vmatpush3.msra.mxu1 %v5391_v3 }
0x179f   :  { %4485 = vmatmul.mubr.msk.f32.vlgmr.msra.gmra.mxu1 %vm23_vm0, %v5138_v8  ;;  %4497 = vmatprep.subr.mxu1 %v5387_v50 }
0x17a0   :  { %4498 = vmatpush3.msra.mxu1 %v5114_v63  ;;  %4501 = vmatprep.mubr.msk.f32.mxu1 %vm4568_vm1, %v5387_v50  ;;  %v5394_v63 = vld [vmem:[#allocation11_spill] sm:$0xff] }
0x17a1   :  { %4499 = vmatprep.subr.mxu1 %v5387_v50 }
0x17a2   :  { %4500 = vmatpush3.msra.mxu1 %v5119_v24 }
0x184f   :  { %v3213_v27 = vpop.f32.mrf.mxu1 }
0x1850   :  { %4452 = vmatmul.mubr.msk.f32.vlgmr.msra.gmra.mxu0 %vm290_vm2, %v3213_v27 }
0x1851   :  { %4466 = vmatpush3.msra.mxu0 %v5392_v28  ;;  %v4446_v29 = vpop.f32.mrf.mxu1  ;;  %4473 = vmatprep.mubr.msk.f32.mxu0 %vm4568_vm1, %v5387_v50 }
0x1852   :  { %4467 = vmatprep.subr.mxu0 %v5387_v50 }
0x1853   :  { %4468 = vmatpush3.msra.mxu0 %v5393_v30 }
0x1854   :  { %4469 = vmatprep.subr.mxu0 %v5387_v50 }
0x1855   :  { %4470 = vmatpush3.msra.mxu0 %v5394_v63 }
0x1856   :  { %4471 = vmatprep.subr.mxu0 %v5387_v50 }
0x1857   :  { %v3371_v24 = vpop.f32.mrf.mxu1  ;;  %4472 = vmatpush3.msra.mxu0 %v5395_v31 }
0x1858   :  { %4474 = vmatmul.mubr.msk.f32.vlgmr.msra.gmra.mxu0 %vm23_vm0, %v5138_v8  ;;  %4487 = vmatprep.subr.mxu0 %v5387_v50 }
0x1859   :  { %v4464_v32 = vpop.f32.mrf.mxu1  ;;  %4489 = vmatprep.mubr.msk.f32.mxu0 %vm4568_vm1, %v5387_v50 }
0x185f   :  { %v3511_v33 = vpop.f32.mrf.mxu1 }
0x1861   :  { %v4486_v34 = vpop.f32.mrf.mxu1 }
0x1910   :  { %v3288_v36 = vpop.f32.mrf.mxu0 }
0x1911   :  { %v3292_v19 = vadd.f32 %v3288_v36, %v2832_v35 }
0x1912   :  { %v4453_v21 = vpop.f32.mrf.mxu0 }
0x1918   :  { %v3441_v17 = vpop.f32.mrf.mxu0 }
0x1919   :  { %4488 = vmatpush3.xpose.msk.msra.mxu0 %vm290_vm2, %v3441_v17 }
0x191a   :  { %v4475_v62 = vpop.f32.mrf.mxu0  ;;  %4492 = vmatprep.subr.mxu0 %v5387_v50 }
0x191c   :  { %4490 = vmatmul.mubr.msk.f32.vlgmr.msra.gmra.mxu0 %vm290_vm2, %v3371_v24 }
0x191d   :  { %4493 = vmatpush3.msra.mxu0 %v3511_v33  ;;  %4494 = vmatprep.mubr.msk.f32.mxu0 %vm4568_vm1, %v5387_v50 }
0x19dc   :  { %v3587_v8 = vpop.f32.mrf.mxu0 }
0x19dd   :  { %v3591_v18 = vsel %vm367_vm3, %v3587_v8, -inf }
0x19de   :  { %3592 = vmax.xlane.f32.xlu0 %v3591_v18  ;;  %v4491_v37 = vpop.f32.mrf.mxu0 }
0x1a67   :  { %v3593_v5 = vpop.xlane.xlu0 %3592 }
0x1a68   :  { %v3594_v58 = vsub.f32 %v3587_v8, %v3593_v5 }
0x1a6a   :  { %v3595_v4 = vmul.f32 1.442695, %v3594_v58 }
0x1a6c   :  { %4541 = vpow2.f32 %v3595_v4 }
0x1a79   :  { %v4542_v6 = vpop.eup %4541 }
0x1a7a   :  { %v3597_v59 = vsel %vm367_vm3, %v4542_v6, 0.0 }
0x1a7b   :  { %3598 = vadd.xlane.f32.xlu1 %v3597_v59 }
0x1b04   :  { %v3599_v60 = vpop.xlane.xlu1 %3598 }
0x1b05   :  { %4543 = vrcp.f32 %v3599_v60 }
0x1b12   :  { %v4544_v61 = vpop.eup %4543 }
0x1b13   :  { %v3601_v16 = vmul.f32 %v4544_v61, %v4542_v6 }
0x1b15   :  { %4495 = vmatmul.mubr.msk.f32.vlgmr.msra.gmra.mxu0 %vm367_vm3, %v3601_v16 }
0x1bd5   :  { %v3671_v50 = vpop.f32.mrf.mxu0 }
0x1bd6   :  { %4502 = vmatmul.mubr.msk.f32.vlgmr.msra.gmra.mxu1 %vm290_vm2, %v3671_v50 }
0x1bd7   :  { %v4496_v23 = vpop.f32.mrf.mxu0 }
0x1c96   :  { %v3746_v38 = vpop.f32.mrf.mxu1 }
0x1c97   :  { %v3750_v52 = vadd.f32 %v3746_v38, %v3292_v19 }
0x1c98   :  { %v4503_v56 = vpop.f32.mrf.mxu1 }
0x1c99   :  { %v3751_v7 = vadd.f32 %v5202_v15, %v3750_v52 }
0x1c9b   :  { %3752 = vst.msk [vmem:[#allocation2 + $0x8] sm:$0xff] %vm23_vm0, %v3751_v7 }
0x1c9c   :  { %4556 = shalt.err (!%p4553_p4)
}
0x1c9d   :  { %s4570_s6 = smov 128   ;;  %s4571_s7 = smov 8  }
0x1c9e   :  { %3764 = dma.vmem_to_hbm [thread:$0]  %s3759_s30, 256, %s5368_s4, [#allocation3], %s4570_s6, %s4570_s6, %s4571_s7  }
0x1c9f   :  { %4565 = dma.done.wait [#allocation3], 256  }
0x1ca0   :  { %4566 = vsyncadd [#allocation3], 4294967040 }
0x1ca1   :  { %3768 = vsyncpa [#allocation3], 1 }

</bundles_post_ra>
